<compile_context>
chip_gen: v5e
topology: v5e:2x2
jax: 0.10.0
libtpu: 0.0.40
codegen_flags: <defaults>
</compile_context>

<pallas_src>
import math
import functools
import numpy as np

import jax
import jax.numpy as jnp
from jax.experimental import pallas as pl
from jax.experimental.pallas import tpu as pltpu

LN_EPS = 1e-5


# ----------------------------------------------------------------------------
# Pallas kernel: full transformer stack (all layers) + final LayerNorm
# ----------------------------------------------------------------------------
def _layernorm(x, g, b):
    mu = jnp.mean(x, axis=-1, keepdims=True)
    var = jnp.mean((x - mu) ** 2, axis=-1, keepdims=True)
    return (x - mu) * jax.lax.rsqrt(var + LN_EPS) * g + b


def encoder_stack_kernel(x_ref, mask_ref,
                         wqkv_ref, wproj_ref, wfc1_ref, wfc2_ref,
                         vec_ref, lnf_ref,
                         o_ref, *, num_head):
    """One pre-norm ViT block per layer-grid step; residual carried in o_ref."""
    l = pl.program_id(1)
    num_layer = pl.num_programs(1)
    Bblk, Npad, D = o_ref.shape
    H = num_head
    hd = D // H
    BN = Bblk * Npad
    scale = 1.0 / math.sqrt(hd)

    # Residual stream is resident in o_ref's VMEM block across the layer axis.
    @pl.when(l == 0)
    def _():
        o_ref[...] = x_ref[...]

    x = o_ref[...]                                        # (Bblk, Npad, D) f32

    # Packed per-layer vectors: rows = ln1_g, ln1_b, ln2_g, ln2_b, bqkv, bproj,
    # bfc1, bfc2 (each padded to width 4D).
    vec = vec_ref[0]                                      # (8, 4D) f32
    ln1_g = vec[0:1, :D]
    ln1_b = vec[1:2, :D]
    ln2_g = vec[2:3, :D]
    ln2_b = vec[3:4, :D]
    bqkv = vec[4:5, :3 * D]
    bproj = vec[5:6, :D]
    bfc1 = vec[6:7, :]
    bfc2 = vec[7:8, :D]

    mask = mask_ref[...]                                  # (1, Npad) additive key bias

    # ---- attention sub-block: x = x + proj(MHSA(LN1(x))) ----
    xn = _layernorm(x, ln1_g, ln1_b)
    xn_flat = xn.reshape(BN, D).astype(jnp.bfloat16)
    qkv = jnp.dot(xn_flat, wqkv_ref[0],
                  preferred_element_type=jnp.float32) + bqkv          # (BN, 3D)
    qkv = qkv.reshape(Bblk, Npad, 3 * D)

    ctx_heads = []
    for h in range(H):                                    # small, unrolled
        qh = qkv[:, :, h * hd:(h + 1) * hd].astype(jnp.bfloat16)
        kh = qkv[:, :, D + h * hd:D + (h + 1) * hd].astype(jnp.bfloat16)
        vh = qkv[:, :, 2 * D + h * hd:2 * D + (h + 1) * hd].astype(jnp.bfloat16)
        s = jnp.einsum('bqd,bkd->bqk', qh, kh,
                       preferred_element_type=jnp.float32) * scale    # (Bblk,Npad,Npad)
        s = s + mask
        s = s - jnp.max(s, axis=-1, keepdims=True)
        p = jnp.exp(s)
        p = p * pl.reciprocal(jnp.sum(p, axis=-1, keepdims=True), approx=True)
        ctx_heads.append(
            jnp.einsum('bqk,bkd->bqd', p.astype(jnp.bfloat16), vh,
                       preferred_element_type=jnp.float32))           # (Bblk,Npad,hd)
    ctx = jnp.concatenate(ctx_heads, axis=-1)                         # (Bblk,Npad,D)

    attn = jnp.dot(ctx.reshape(BN, D).astype(jnp.bfloat16), wproj_ref[0],
                   preferred_element_type=jnp.float32) + bproj        # (BN, D)
    x = x + attn.reshape(Bblk, Npad, D)

    # ---- MLP sub-block: x = x + fc2(GELU(fc1(LN2(x)))) ----
    xn2 = _layernorm(x, ln2_g, ln2_b)
    h1 = jnp.dot(xn2.reshape(BN, D).astype(jnp.bfloat16), wfc1_ref[0],
                 preferred_element_type=jnp.float32) + bfc1           # (BN, 4D)
    # TODO(synk): PyTorch nn.GELU defaults to the exact erf GELU; tanh approx used here.
    h1 = jax.nn.gelu(h1, approximate=True)
    h2 = jnp.dot(h1.astype(jnp.bfloat16), wfc2_ref[0],
                 preferred_element_type=jnp.float32) + bfc2           # (BN, D)
    x = x + h2.reshape(Bblk, Npad, D)

    o_ref[...] = x

    # Fused final LayerNorm on the last layer (overwrites the residual write).
    @pl.when(l == num_layer - 1)
    def _():
        lnf = lnf_ref[...]
        o_ref[...] = _layernorm(x, lnf[0:1], lnf[1:2])


# ----------------------------------------------------------------------------
# Pallas wrapper
# ----------------------------------------------------------------------------
def _vmem_estimate(bblk, Npad, D):
    """Rough VMEM footprint in bytes for one grid step."""
    w = 2 * 2 * (3 * D * D + D * D + 4 * D * D + 4 * D * D)   # bf16 weights, 2 buffers
    vec = 2 * 8 * 4 * D * 4
    resid = 2 * 2 * bblk * Npad * D * 4                       # x + o resident blocks
    act = bblk * Npad * (3 * D + 4 * D + 4 * D) * 4           # qkv / h1 / misc f32 temps
    scores = 4 * bblk * Npad * Npad * 4                       # per-head score/prob temps
    return w + vec + resid + act + scores


def _pick_block_batch(B, Npad, D, vmem_cap):
    """Largest batch block that keeps the footprint well inside VMEM.
    v7x (64 MiB) naturally picks ~half of what v5e/v6e (128 MiB) would."""
    for cand in (8, 4, 2, 1):
        if _vmem_estimate(cand, Npad, D) <= int(0.7 * vmem_cap):
            return max(1, min(cand, B))
    return 1


def run_encoder_stack(x, mask, params, *, num_head):
    """x: (B, Npad, D) f32, mask: (1, Npad) f32 -> (B, Npad, D) f32."""
    B, Npad, D = x.shape
    num_layer = params["wqkv"].shape[0]

    try:
        vmem_cap = pltpu.get_tpu_info().vmem_capacity_bytes
    except Exception:
        vmem_cap = 64 << 20                                   # conservative (v7x)

    bblk = _pick_block_batch(B, Npad, D, vmem_cap)
    Bpad = ((B + bblk - 1) // bblk) * bblk
    if Bpad != B:
        x = jnp.pad(x, ((0, Bpad - B), (0, 0), (0, 0)))

    vmem_limit = min(max(_vmem_estimate(bblk, Npad, D), 32 << 20),
                     int(0.9 * vmem_cap))

    layer_w = [params["wqkv"], params["wproj"], params["wfc1"], params["wfc2"],
               params["vec"]]

    def wspec(p):                                             # (L, a, b) -> layer-streamed
        return pl.BlockSpec((1,) + p.shape[1:], lambda bi, l: (l, 0, 0))

    in_specs = [pl.BlockSpec((bblk, Npad, D), lambda bi, l: (bi, 0, 0)),
                pl.BlockSpec((1, Npad), lambda bi, l: (0, 0))]
    in_specs += [wspec(p) for p in layer_w]
    in_specs += [pl.BlockSpec(params["lnf"].shape, lambda bi, l: (0, 0))]

    y = pl.pallas_call(
        functools.partial(encoder_stack_kernel, num_head=num_head),
        out_shape=jax.ShapeDtypeStruct((Bpad, Npad, D), jnp.float32),
        grid=(Bpad // bblk, num_layer),
        in_specs=in_specs,
        out_specs=pl.BlockSpec((bblk, Npad, D), lambda bi, l: (bi, 0, 0)),
        compiler_params=pltpu.CompilerParams(
            dimension_semantics=("parallel", "arbitrary"),
            vmem_limit_bytes=vmem_limit),
    )(x, mask, *layer_w, params["lnf"])
    return y[:B]


# ----------------------------------------------------------------------------
# Parameter init (deterministic, mimics the PyTorch defaults)
# ----------------------------------------------------------------------------
def _linear_init(key, fan_in, fan_out):
    k1, k2 = jax.random.split(key)
    bound = 1.0 / math.sqrt(fan_in)
    w = jax.random.uniform(k1, (fan_in, fan_out), jnp.float32, -bound, bound)
    b = jax.random.uniform(k2, (fan_out,), jnp.float32, -bound, bound)
    return w, b


def init_params(key, *, seq_length, dim_indices, emb_dim, num_layer, num_head,
                num_embeddings):
    D = emb_dim * dim_indices
    keys = jax.random.split(key, 3 + num_layer)

    params = {}
    # trunc_normal_(std=0.02) for cls token / positional embedding
    params["cls_token"] = 0.02 * jax.random.truncated_normal(
        keys[0], -2.0, 2.0, (1, 1, D), jnp.float32)
    params["pos_embedding"] = 0.02 * jax.random.truncated_normal(
        keys[1], -2.0, 2.0, (seq_length, 1, D), jnp.float32)
    # nn.Embedding default: N(0, 1)
    params["embedding"] = jax.random.normal(keys[2], (num_embeddings, emb_dim),
                                            jnp.float32)

    wqkv_l, wproj_l, wfc1_l, wfc2_l, vec_l = [], [], [], [], []
    for l in range(num_layer):
        bk = jax.random.split(keys[3 + l], 4)
        w_qkv, b_qkv = _linear_init(bk[0], D, 3 * D)
        w_proj, b_proj = _linear_init(bk[1], D, D)
        w_fc1, b_fc1 = _linear_init(bk[2], D, 4 * D)
        w_fc2, b_fc2 = _linear_init(bk[3], 4 * D, D)

        wqkv_l.append(w_qkv.astype(jnp.bfloat16))      # (D, 3D) fused QKV
        wproj_l.append(w_proj.astype(jnp.bfloat16))    # (D, D)
        wfc1_l.append(w_fc1.astype(jnp.bfloat16))      # (D, 4D)
        wfc2_l.append(w_fc2.astype(jnp.bfloat16))      # (4D, D)

        # packed LN params + biases: rows ln1_g, ln1_b, ln2_g, ln2_b, bqkv,
        # bproj, bfc1, bfc2 (width 4D, zero-padded)
        vec = jnp.zeros((8, 4 * D), jnp.float32)
        vec = vec.at[0, :D].set(jnp.ones((D,), jnp.float32))
        vec = vec.at[2, :D].set(jnp.ones((D,), jnp.float32))
        vec = vec.at[4, :3 * D].set(b_qkv)
        vec = vec.at[5, :D].set(b_proj)
        vec = vec.at[6, :].set(b_fc1)
        vec = vec.at[7, :D].set(b_fc2)
        vec_l.append(vec)

    params["wqkv"] = jnp.stack(wqkv_l, axis=0)
    params["wproj"] = jnp.stack(wproj_l, axis=0)
    params["wfc1"] = jnp.stack(wfc1_l, axis=0)
    params["wfc2"] = jnp.stack(wfc2_l, axis=0)
    params["vec"] = jnp.stack(vec_l, axis=0)
    params["lnf"] = jnp.concatenate(
        [jnp.ones((1, D), jnp.float32), jnp.zeros((1, D), jnp.float32)], axis=0)
    return params


# ----------------------------------------------------------------------------
# MAE_Encoder forward
# ----------------------------------------------------------------------------
def random_indexes(size, rng):
    forward_indexes = np.arange(size)
    rng.shuffle(forward_indexes)
    backward_indexes = np.argsort(forward_indexes)
    return forward_indexes, backward_indexes


def mae_encoder_forward(tokens, params, *, seq_length, dim_indices, emb_dim,
                        num_head, mask_ratio, shuffle_seed=0):
    """tokens: int32 (B, T, dim_indices) VQ indices -> (features (N,B,D), backward_indexes)."""
    B, T, C = tokens.shape
    D = emb_dim * dim_indices

    # 'b t c -> t b c', embedding lookup, reshape to (T, B, D)
    tok = jnp.transpose(tokens, (1, 0, 2))                         # (T, B, C)
    x = jnp.take(params["embedding"], tok, axis=0)                 # (T, B, C, emb_dim)
    x = x.reshape(seq_length, B, D)

    # trainable positional embedding (T, 1, D), broadcast over batch
    x = x + params["pos_embedding"]

    # PatchShuffle: host-side numpy RNG, like the PyTorch module.
    # TODO(synk): host-side RNG is not jit-traceable; pass precomputed indexes if jitting.
    rng = np.random.default_rng(shuffle_seed)
    idx = [random_indexes(T, rng) for _ in range(B)]
    fwd = np.stack([i[0] for i in idx], axis=-1)                   # (T, B)
    bwd = np.stack([i[1] for i in idx], axis=-1)                   # (T, B)
    remain_T = int(T * (1 - mask_ratio))
    fwd_j = jnp.asarray(fwd, dtype=jnp.int32)
    x = jnp.take_along_axis(x, fwd_j[:, :, None], axis=0)[:remain_T]

    # prepend cls token, go to (B, N, D)
    cls = jnp.broadcast_to(params["cls_token"], (1, B, D))
    x = jnp.concatenate([cls, x], axis=0)                          # (N, B, D)
    x = jnp.transpose(x, (1, 0, 2))                                # (B, N, D)

    # pad tokens to a multiple of 16 (bf16 sublane packing); precompute the
    # key-padding additive bias once in the wrapper.
    N = x.shape[1]
    Npad = ((N + 15) // 16) * 16
    if Npad != N:
        x = jnp.pad(x, ((0, 0), (0, Npad - N), (0, 0)))
    key_ids = jnp.arange(Npad, dtype=jnp.int32)[None, :]
    mask = jnp.where(key_ids < N, 0.0, -1e30).astype(jnp.float32)  # (1, Npad)

    # fused transformer stack + final LayerNorm (single Pallas kernel)
    y = run_encoder_stack(x, mask, params, num_head=num_head)
    y = y[:, :N, :]

    features = jnp.transpose(y, (1, 0, 2))                         # (N, B, D)
    return features, jnp.asarray(bwd, dtype=jnp.int32)


# ----------------------------------------------------------------------------
if __name__ == "__main__":
    # small but consistent config
    seq_length = 16
    dim_indices = 4
    emb_dim = 8
    num_layer = 2
    num_head = 2
    mask_ratio = 0.25
    num_embeddings = 64
    B = 2
    D = emb_dim * dim_indices

    key = jax.random.PRNGKey(0)
    pkey, tkey = jax.random.split(key)
    params = init_params(pkey, seq_length=seq_length, dim_indices=dim_indices,
                         emb_dim=emb_dim, num_layer=num_layer, num_head=num_head,
                         num_embeddings=num_embeddings)

    tokens = jax.random.randint(tkey, (B, seq_length, dim_indices), 0,
                                num_embeddings, dtype=jnp.int32)

    features, backward_indexes = mae_encoder_forward(
        tokens, params, seq_length=seq_length, dim_indices=dim_indices,
        emb_dim=emb_dim, num_head=num_head, mask_ratio=mask_ratio)

    jax.block_until_ready(features)
    jax.block_until_ready(backward_indexes)

    expected_N = int(seq_length * (1 - mask_ratio)) + 1
    assert features.shape == (expected_N, B, D), features.shape
    assert backward_indexes.shape == (seq_length, B), backward_indexes.shape
    assert bool(jnp.all(jnp.isfinite(features)))
    print("KERNEL_OK")
</pallas_src>

<mosaic_0001>
module attributes {stable_mosaic.version = 11 : i64} {
  func.func @encoder_stack_kernel(%arg0: i32, %arg1: i32, %arg2: memref<2x16x32xf32, #tpu.memory_space<vmem>>, %arg3: memref<1x16xf32, #tpu.memory_space<vmem>>, %arg4: memref<1x32x96xbf16, #tpu.memory_space<vmem>>, %arg5: memref<1x32x32xbf16, #tpu.memory_space<vmem>>, %arg6: memref<1x32x128xbf16, #tpu.memory_space<vmem>>, %arg7: memref<1x128x32xbf16, #tpu.memory_space<vmem>>, %arg8: memref<1x8x128xf32, #tpu.memory_space<vmem>>, %arg9: memref<2x32xf32, #tpu.memory_space<vmem>>, %arg10: memref<2x16x32xf32, #tpu.memory_space<vmem>>) attributes {dimension_semantics = [#tpu.dimension_semantics<parallel>, #tpu.dimension_semantics<arbitrary>], iteration_bounds = array<i64: 1, 2>, scalar_prefetch = 0 : i64, scratch_operands = 0 : i64, tpu.core_type = #tpu.core_type<tc>, window_params = [{transform_indices = @transform_0, window_bounds = array<i64: 2, 16, 32>}, {pipeline_mode = #tpu.pipeline_mode<synchronous>, transform_indices = @transform_1, window_bounds = array<i64: 1, 16>}, {transform_indices = @transform_2, window_bounds = array<i64: 1, 32, 96>}, {transform_indices = @transform_3, window_bounds = array<i64: 1, 32, 32>}, {transform_indices = @transform_4, window_bounds = array<i64: 1, 32, 128>}, {transform_indices = @transform_5, window_bounds = array<i64: 1, 128, 32>}, {transform_indices = @transform_6, window_bounds = array<i64: 1, 8, 128>}, {pipeline_mode = #tpu.pipeline_mode<synchronous>, transform_indices = @transform_7, window_bounds = array<i64: 2, 32>}, {transform_indices = @transform_8, window_bounds = array<i64: 2, 16, 32>}]} {
    %c0_i32 = arith.constant 0 : i32
    %0 = arith.cmpi eq, %arg1, %c0_i32 : i32
    %1 = arith.extui %0 : i1 to i32
    %c0_i32_0 = arith.constant 0 : i32
    %2 = arith.cmpi ne, %1, %c0_i32_0 : i32
    scf.if %2 {
      %c0_51 = arith.constant 0 : index
      %c0_52 = arith.constant 0 : index
      %c0_53 = arith.constant 0 : index
      %161 = vector.load %arg2[%c0_51, %c0_52, %c0_53] : memref<2x16x32xf32, #tpu.memory_space<vmem>>, vector<2x16x32xf32>
      %c0_54 = arith.constant 0 : index
      %c0_55 = arith.constant 0 : index
      %c0_56 = arith.constant 0 : index
      %162 = vector.load %arg10[%c0_54, %c0_55, %c0_56] : memref<2x16x32xf32, #tpu.memory_space<vmem>>, vector<2x16x32xf32>
      tpu.vector_store %arg10[%c0_54, %c0_55, %c0_56], %161 {strides = array<i32>} : memref<2x16x32xf32, #tpu.memory_space<vmem>>, vector<2x16x32xf32>,
    } else {
    }
    %c0 = arith.constant 0 : index
    %c0_1 = arith.constant 0 : index
    %c0_2 = arith.constant 0 : index
    %3 = vector.load %arg10[%c0, %c0_1, %c0_2] : memref<2x16x32xf32, #tpu.memory_space<vmem>>, vector<2x16x32xf32>
    %c0_3 = arith.constant 0 : index
    %c0_4 = arith.constant 0 : index
    %c0_5 = arith.constant 0 : index
    %4 = vector.load %arg8[%c0_3, %c0_4, %c0_5] : memref<1x8x128xf32, #tpu.memory_space<vmem>>, vector<1x8x128xf32>
    %5 = vector.shape_cast %4 : vector<1x8x128xf32> to vector<8x128xf32>
    %6 = vector.extract_strided_slice %5 {offsets = [0, 0], sizes = [1, 32], strides = [1, 1]} : vector<8x128xf32> to vector<1x32xf32>
    %7 = vector.extract_strided_slice %5 {offsets = [1, 0], sizes = [1, 32], strides = [1, 1]} : vector<8x128xf32> to vector<1x32xf32>
    %8 = vector.extract_strided_slice %5 {offsets = [2, 0], sizes = [1, 32], strides = [1, 1]} : vector<8x128xf32> to vector<1x32xf32>
    %9 = vector.extract_strided_slice %5 {offsets = [3, 0], sizes = [1, 32], strides = [1, 1]} : vector<8x128xf32> to vector<1x32xf32>
    %10 = vector.extract_strided_slice %5 {offsets = [4, 0], sizes = [1, 96], strides = [1, 1]} : vector<8x128xf32> to vector<1x96xf32>
    %11 = vector.extract_strided_slice %5 {offsets = [5, 0], sizes = [1, 32], strides = [1, 1]} : vector<8x128xf32> to vector<1x32xf32>
    %12 = vector.extract_strided_slice %5 {offsets = [6, 0], sizes = [1, 128], strides = [1, 1]} : vector<8x128xf32> to vector<1x128xf32>
    %13 = vector.extract_strided_slice %5 {offsets = [7, 0], sizes = [1, 32], strides = [1, 1]} : vector<8x128xf32> to vector<1x32xf32>
    %c0_6 = arith.constant 0 : index
    %c0_7 = arith.constant 0 : index
    %14 = vector.load %arg3[%c0_6, %c0_7] : memref<1x16xf32, #tpu.memory_space<vmem>>, vector<1x16xf32>
    %cst = arith.constant dense<0.000000e+00> : vector<2x16xf32>
    %15 = vector.multi_reduction <add>, %3, %cst [2] : vector<2x16x32xf32> to vector<2x16xf32>
    %16 = vector.shape_cast %15 : vector<2x16xf32> to vector<2x16x1xf32>
    %cst_8 = arith.constant 3.200000e+01 : f32
    %17 = vector.broadcast %cst_8 : f32 to vector<2x16x1xf32>
    %18 = arith.divf %16, %17 : vector<2x16x1xf32>
    %19 = vector.broadcast %18 : vector<2x16x1xf32> to vector<2x16x32xf32>
    %20 = arith.subf %3, %19 : vector<2x16x32xf32>
    %21 = arith.mulf %20, %20 : vector<2x16x32xf32>
    %cst_9 = arith.constant dense<0.000000e+00> : vector<2x16xf32>
    %22 = vector.multi_reduction <add>, %21, %cst_9 [2] : vector<2x16x32xf32> to vector<2x16xf32>
    %23 = vector.shape_cast %22 : vector<2x16xf32> to vector<2x16x1xf32>
    %cst_10 = arith.constant 3.200000e+01 : f32
    %24 = vector.broadcast %cst_10 : f32 to vector<2x16x1xf32>
    %25 = arith.divf %23, %24 : vector<2x16x1xf32>
    %26 = vector.broadcast %18 : vector<2x16x1xf32> to vector<2x16x32xf32>
    %27 = arith.subf %3, %26 : vector<2x16x32xf32>
    %cst_11 = arith.constant 9.99999974E-6 : f32
    %28 = vector.broadcast %cst_11 : f32 to vector<2x16x1xf32>
    %29 = arith.addf %25, %28 : vector<2x16x1xf32>
    %30 = math.rsqrt %29 : vector<2x16x1xf32>
    %31 = vector.broadcast %30 : vector<2x16x1xf32> to vector<2x16x32xf32>
    %32 = arith.mulf %27, %31 : vector<2x16x32xf32>
    %33 = vector.shape_cast %6 : vector<1x32xf32> to vector<1x1x32xf32>
    %34 = vector.broadcast %33 : vector<1x1x32xf32> to vector<2x16x32xf32>
    %35 = arith.mulf %32, %34 : vector<2x16x32xf32>
    %36 = vector.shape_cast %7 : vector<1x32xf32> to vector<1x1x32xf32>
    %37 = vector.broadcast %36 : vector<1x1x32xf32> to vector<2x16x32xf32>
    %38 = arith.addf %35, %37 : vector<2x16x32xf32>
    %39 = vector.shape_cast %38 : vector<2x16x32xf32> to vector<32x32xf32>
    %40 = arith.truncf %39 : vector<32x32xf32> to vector<32x32xbf16>
    %c0_12 = arith.constant 0 : index
    %c0_13 = arith.constant 0 : index
    %c0_14 = arith.constant 0 : index
    %41 = vector.load %arg4[%c0_12, %c0_13, %c0_14] : memref<1x32x96xbf16, #tpu.memory_space<vmem>>, vector<1x32x96xbf16>
    %42 = vector.shape_cast %41 : vector<1x32x96xbf16> to vector<32x96xbf16>
    %cst_15 = arith.constant dense<0.000000e+00> : vector<32x96xf32>
    %43 = tpu.matmul %40, %42, %cst_15 {dimension_numbers = #tpu.dot_dimension_numbers<[1], [0], [0], [1], [0, 0, 1, 1], [], []>} : vector<32x32xbf16>, vector<32x96xbf16>, vector<32x96xf32> -> vector<32x96xf32>
    %44 = vector.broadcast %10 : vector<1x96xf32> to vector<32x96xf32>
    %45 = arith.addf %43, %44 : vector<32x96xf32>
    %46 = vector.shape_cast %45 : vector<32x96xf32> to vector<2x16x96xf32>
    %47 = vector.extract_strided_slice %46 {offsets = [0, 0, 0], sizes = [2, 16, 16], strides = [1, 1, 1]} : vector<2x16x96xf32> to vector<2x16x16xf32>
    %48 = arith.truncf %47 : vector<2x16x16xf32> to vector<2x16x16xbf16>
    %49 = vector.extract_strided_slice %46 {offsets = [0, 0, 32], sizes = [2, 16, 16], strides = [1, 1, 1]} : vector<2x16x96xf32> to vector<2x16x16xf32>
    %50 = arith.truncf %49 : vector<2x16x16xf32> to vector<2x16x16xbf16>
    %51 = vector.extract_strided_slice %46 {offsets = [0, 0, 64], sizes = [2, 16, 16], strides = [1, 1, 1]} : vector<2x16x96xf32> to vector<2x16x16xf32>
    %52 = arith.truncf %51 : vector<2x16x16xf32> to vector<2x16x16xbf16>
    "tpu.trace_start"() <{level = 10 : i32, message = "bqd,bkd->bqk"}> : () -> ()
    %cst_16 = arith.constant dense<0.000000e+00> : vector<2x16x16xf32>
    %53 = tpu.matmul %48, %50, %cst_16 {dimension_numbers = #tpu.dot_dimension_numbers<[2], [2], [1], [1], [0, 0, 0, 1, 1, 1], [0], [0]>} : vector<2x16x16xbf16>, vector<2x16x16xbf16>, vector<2x16x16xf32> -> vector<2x16x16xf32>
    "tpu.trace_stop"() : () -> ()
    %cst_17 = arith.constant 2.500000e-01 : f32
    %54 = vector.broadcast %cst_17 : f32 to vector<2x16x16xf32>
    %55 = arith.mulf %53, %54 : vector<2x16x16xf32>
    %56 = vector.shape_cast %14 : vector<1x16xf32> to vector<1x1x16xf32>
    %57 = vector.broadcast %56 : vector<1x1x16xf32> to vector<2x16x16xf32>
    %58 = arith.addf %55, %57 : vector<2x16x16xf32>
    %cst_18 = arith.constant dense<0xFF800000> : vector<2x16xf32>
    %59 = vector.multi_reduction <maximumf>, %58, %cst_18 [2] : vector<2x16x16xf32> to vector<2x16xf32>
    %60 = vector.shape_cast %59 : vector<2x16xf32> to vector<2x16x1xf32>
    %61 = vector.broadcast %60 : vector<2x16x1xf32> to vector<2x16x16xf32>
    %62 = arith.subf %58, %61 : vector<2x16x16xf32>
    %63 = math.exp %62 : vector<2x16x16xf32>
    %cst_19 = arith.constant dense<0.000000e+00> : vector<2x16xf32>
    %64 = vector.multi_reduction <add>, %63, %cst_19 [2] : vector<2x16x16xf32> to vector<2x16xf32>
    %65 = vector.shape_cast %64 : vector<2x16xf32> to vector<2x16x1xf32>
    %66 = tpu.reciprocal %65 {approx = true} : vector<2x16x1xf32> -> vector<2x16x1xf32>
    %67 = vector.broadcast %66 : vector<2x16x1xf32> to vector<2x16x16xf32>
    %68 = arith.mulf %63, %67 : vector<2x16x16xf32>
    %69 = arith.truncf %68 : vector<2x16x16xf32> to vector<2x16x16xbf16>
    "tpu.trace_start"() <{level = 10 : i32, message = "bqk,bkd->bqd"}> : () -> ()
    %cst_20 = arith.constant dense<0.000000e+00> : vector<2x16x16xf32>
    %70 = tpu.matmul %69, %52, %cst_20 {dimension_numbers = #tpu.dot_dimension_numbers<[2], [1], [1], [2], [0, 0, 0, 1, 1, 2], [0], [0]>} : vector<2x16x16xbf16>, vector<2x16x16xbf16>, vector<2x16x16xf32> -> vector<2x16x16xf32>
    "tpu.trace_stop"() : () -> ()
    %71 = vector.extract_strided_slice %46 {offsets = [0, 0, 16], sizes = [2, 16, 16], strides = [1, 1, 1]} : vector<2x16x96xf32> to vector<2x16x16xf32>
    %72 = arith.truncf %71 : vector<2x16x16xf32> to vector<2x16x16xbf16>
    %73 = vector.extract_strided_slice %46 {offsets = [0, 0, 48], sizes = [2, 16, 16], strides = [1, 1, 1]} : vector<2x16x96xf32> to vector<2x16x16xf32>
    %74 = arith.truncf %73 : vector<2x16x16xf32> to vector<2x16x16xbf16>
    %75 = vector.extract_strided_slice %46 {offsets = [0, 0, 80], sizes = [2, 16, 16], strides = [1, 1, 1]} : vector<2x16x96xf32> to vector<2x16x16xf32>
    %76 = arith.truncf %75 : vector<2x16x16xf32> to vector<2x16x16xbf16>
    "tpu.trace_start"() <{level = 10 : i32, message = "bqd,bkd->bqk"}> : () -> ()
    %cst_21 = arith.constant dense<0.000000e+00> : vector<2x16x16xf32>
    %77 = tpu.matmul %72, %74, %cst_21 {dimension_numbers = #tpu.dot_dimension_numbers<[2], [2], [1], [1], [0, 0, 0, 1, 1, 1], [0], [0]>} : vector<2x16x16xbf16>, vector<2x16x16xbf16>, vector<2x16x16xf32> -> vector<2x16x16xf32>
    "tpu.trace_stop"() : () -> ()
    %cst_22 = arith.constant 2.500000e-01 : f32
    %78 = vector.broadcast %cst_22 : f32 to vector<2x16x16xf32>
    %79 = arith.mulf %77, %78 : vector<2x16x16xf32>
    %80 = vector.shape_cast %14 : vector<1x16xf32> to vector<1x1x16xf32>
    %81 = vector.broadcast %80 : vector<1x1x16xf32> to vector<2x16x16xf32>
    %82 = arith.addf %79, %81 : vector<2x16x16xf32>
    %cst_23 = arith.constant dense<0xFF800000> : vector<2x16xf32>
    %83 = vector.multi_reduction <maximumf>, %82, %cst_23 [2] : vector<2x16x16xf32> to vector<2x16xf32>
    %84 = vector.shape_cast %83 : vector<2x16xf32> to vector<2x16x1xf32>
    %85 = vector.broadcast %84 : vector<2x16x1xf32> to vector<2x16x16xf32>
    %86 = arith.subf %82, %85 : vector<2x16x16xf32>
    %87 = math.exp %86 : vector<2x16x16xf32>
    %cst_24 = arith.constant dense<0.000000e+00> : vector<2x16xf32>
    %88 = vector.multi_reduction <add>, %87, %cst_24 [2] : vector<2x16x16xf32> to vector<2x16xf32>
    %89 = vector.shape_cast %88 : vector<2x16xf32> to vector<2x16x1xf32>
    %90 = tpu.reciprocal %89 {approx = true} : vector<2x16x1xf32> -> vector<2x16x1xf32>
    %91 = vector.broadcast %90 : vector<2x16x1xf32> to vector<2x16x16xf32>
    %92 = arith.mulf %87, %91 : vector<2x16x16xf32>
    %93 = arith.truncf %92 : vector<2x16x16xf32> to vector<2x16x16xbf16>
    "tpu.trace_start"() <{level = 10 : i32, message = "bqk,bkd->bqd"}> : () -> ()
    %cst_25 = arith.constant dense<0.000000e+00> : vector<2x16x16xf32>
    %94 = tpu.matmul %93, %76, %cst_25 {dimension_numbers = #tpu.dot_dimension_numbers<[2], [1], [1], [2], [0, 0, 0, 1, 1, 2], [0], [0]>} : vector<2x16x16xbf16>, vector<2x16x16xbf16>, vector<2x16x16xf32> -> vector<2x16x16xf32>
    "tpu.trace_stop"() : () -> ()
    %95 = tpu.concatenate %70, %94 in 2 : vector<2x16x16xf32>, vector<2x16x16xf32> -> vector<2x16x32xf32>
    %96 = vector.shape_cast %95 : vector<2x16x32xf32> to vector<32x32xf32>
    %97 = arith.truncf %96 : vector<32x32xf32> to vector<32x32xbf16>
    %c0_26 = arith.constant 0 : index
    %c0_27 = arith.constant 0 : index
    %c0_28 = arith.constant 0 : index
    %98 = vector.load %arg5[%c0_26, %c0_27, %c0_28] : memref<1x32x32xbf16, #tpu.memory_space<vmem>>, vector<1x32x32xbf16>
    %99 = vector.shape_cast %98 : vector<1x32x32xbf16> to vector<32x32xbf16>
    %cst_29 = arith.constant dense<0.000000e+00> : vector<32x32xf32>
    %100 = tpu.matmul %97, %99, %cst_29 {dimension_numbers = #tpu.dot_dimension_numbers<[1], [0], [0], [1], [0, 0, 1, 1], [], []>} : vector<32x32xbf16>, vector<32x32xbf16>, vector<32x32xf32> -> vector<32x32xf32>
    %101 = vector.broadcast %11 : vector<1x32xf32> to vector<32x32xf32>
    %102 = arith.addf %100, %101 : vector<32x32xf32>
    %103 = vector.shape_cast %102 : vector<32x32xf32> to vector<2x16x32xf32>
    %104 = arith.addf %3, %103 : vector<2x16x32xf32>
    %cst_30 = arith.constant dense<0.000000e+00> : vector<2x16xf32>
    %105 = vector.multi_reduction <add>, %104, %cst_30 [2] : vector<2x16x32xf32> to vector<2x16xf32>
    %106 = vector.shape_cast %105 : vector<2x16xf32> to vector<2x16x1xf32>
    %cst_31 = arith.constant 3.200000e+01 : f32
    %107 = vector.broadcast %cst_31 : f32 to vector<2x16x1xf32>
    %108 = arith.divf %106, %107 : vector<2x16x1xf32>
    %109 = vector.broadcast %108 : vector<2x16x1xf32> to vector<2x16x32xf32>
    %110 = arith.subf %104, %109 : vector<2x16x32xf32>
    %111 = arith.mulf %110, %110 : vector<2x16x32xf32>
    %cst_32 = arith.constant dense<0.000000e+00> : vector<2x16xf32>
    %112 = vector.multi_reduction <add>, %111, %cst_32 [2] : vector<2x16x32xf32> to vector<2x16xf32>
    %113 = vector.shape_cast %112 : vector<2x16xf32> to vector<2x16x1xf32>
    %cst_33 = arith.constant 3.200000e+01 : f32
    %114 = vector.broadcast %cst_33 : f32 to vector<2x16x1xf32>
    %115 = arith.divf %113, %114 : vector<2x16x1xf32>
    %116 = vector.broadcast %108 : vector<2x16x1xf32> to vector<2x16x32xf32>
    %117 = arith.subf %104, %116 : vector<2x16x32xf32>
    %cst_34 = arith.constant 9.99999974E-6 : f32
    %118 = vector.broadcast %cst_34 : f32 to vector<2x16x1xf32>
    %119 = arith.addf %115, %118 : vector<2x16x1xf32>
    %120 = math.rsqrt %119 : vector<2x16x1xf32>
    %121 = vector.broadcast %120 : vector<2x16x1xf32> to vector<2x16x32xf32>
    %122 = arith.mulf %117, %121 : vector<2x16x32xf32>
    %123 = vector.shape_cast %8 : vector<1x32xf32> to vector<1x1x32xf32>
    %124 = vector.broadcast %123 : vector<1x1x32xf32> to vector<2x16x32xf32>
    %125 = arith.mulf %122, %124 : vector<2x16x32xf32>
    %126 = vector.shape_cast %9 : vector<1x32xf32> to vector<1x1x32xf32>
    %127 = vector.broadcast %126 : vector<1x1x32xf32> to vector<2x16x32xf32>
    %128 = arith.addf %125, %127 : vector<2x16x32xf32>
    %129 = vector.shape_cast %128 : vector<2x16x32xf32> to vector<32x32xf32>
    %130 = arith.truncf %129 : vector<32x32xf32> to vector<32x32xbf16>
    %c0_35 = arith.constant 0 : index
    %c0_36 = arith.constant 0 : index
    %c0_37 = arith.constant 0 : index
    %131 = vector.load %arg6[%c0_35, %c0_36, %c0_37] : memref<1x32x128xbf16, #tpu.memory_space<vmem>>, vector<1x32x128xbf16>
    %132 = vector.shape_cast %131 : vector<1x32x128xbf16> to vector<32x128xbf16>
    %cst_38 = arith.constant dense<0.000000e+00> : vector<32x128xf32>
    %133 = tpu.matmul %130, %132, %cst_38 {dimension_numbers = #tpu.dot_dimension_numbers<[1], [0], [0], [1], [0, 0, 1, 1], [], []>} : vector<32x32xbf16>, vector<32x128xbf16>, vector<32x128xf32> -> vector<32x128xf32>
    %134 = vector.broadcast %12 : vector<1x128xf32> to vector<32x128xf32>
    %135 = arith.addf %133, %134 : vector<32x128xf32>
    %136 = arith.mulf %135, %135 : vector<32x128xf32>
    %137 = arith.mulf %135, %136 : vector<32x128xf32>
    %cst_39 = arith.constant 4.471500e-02 : f32
    %138 = vector.broadcast %cst_39 : f32 to vector<32x128xf32>
    %139 = arith.mulf %138, %137 : vector<32x128xf32>
    %140 = arith.addf %135, %139 : vector<32x128xf32>
    %cst_40 = arith.constant 0.797884583 : f32
    %141 = vector.broadcast %cst_40 : f32 to vector<32x128xf32>
    %142 = arith.mulf %141, %140 : vector<32x128xf32>
    %143 = math.tanh %142 : vector<32x128xf32>
    %cst_41 = arith.constant 1.000000e+00 : f32
    %144 = vector.broadcast %cst_41 : f32 to vector<32x128xf32>
    %145 = arith.addf %144, %143 : vector<32x128xf32>
    %cst_42 = arith.constant 5.000000e-01 : f32
    %146 = vector.broadcast %cst_42 : f32 to vector<32x128xf32>
    %147 = arith.mulf %146, %145 : vector<32x128xf32>
    %148 = arith.mulf %135, %147 : vector<32x128xf32>
    %149 = arith.truncf %148 : vector<32x128xf32> to vector<32x128xbf16>
    %c0_43 = arith.constant 0 : index
    %c0_44 = arith.constant 0 : index
    %c0_45 = arith.constant 0 : index
    %150 = vector.load %arg7[%c0_43, %c0_44, %c0_45] : memref<1x128x32xbf16, #tpu.memory_space<vmem>>, vector<1x128x32xbf16>
    %151 = vector.shape_cast %150 : vector<1x128x32xbf16> to vector<128x32xbf16>
    %cst_46 = arith.constant dense<0.000000e+00> : vector<32x32xf32>
    %152 = tpu.matmul %149, %151, %cst_46 {dimension_numbers = #tpu.dot_dimension_numbers<[1], [0], [0], [1], [0, 0, 1, 1], [], []>} : vector<32x128xbf16>, vector<128x32xbf16>, vector<32x32xf32> -> vector<32x32xf32>
    %153 = vector.broadcast %13 : vector<1x32xf32> to vector<32x32xf32>
    %154 = arith.addf %152, %153 : vector<32x32xf32>
    %155 = vector.shape_cast %154 : vector<32x32xf32> to vector<2x16x32xf32>
    %156 = arith.addf %104, %155 : vector<2x16x32xf32>
    %c0_47 = arith.constant 0 : index
    %c0_48 = arith.constant 0 : index
    %c0_49 = arith.constant 0 : index
    %157 = vector.load %arg10[%c0_47, %c0_48, %c0_49] : memref<2x16x32xf32, #tpu.memory_space<vmem>>, vector<2x16x32xf32>
    tpu.vector_store %arg10[%c0_47, %c0_48, %c0_49], %156 {strides = array<i32>} : memref<2x16x32xf32, #tpu.memory_space<vmem>>, vector<2x16x32xf32>,
    %c1_i32 = arith.constant 1 : i32
    %158 = arith.cmpi eq, %arg1, %c1_i32 : i32
    %159 = arith.extui %158 : i1 to i32
    %c0_i32_50 = arith.constant 0 : i32
    %160 = arith.cmpi ne, %159, %c0_i32_50 : i32
    scf.if %160 {
      %c0_51 = arith.constant 0 : index
      %c0_52 = arith.constant 0 : index
      %161 = vector.load %arg9[%c0_51, %c0_52] : memref<2x32xf32, #tpu.memory_space<vmem>>, vector<2x32xf32>
      %162 = vector.extract_strided_slice %161 {offsets = [0, 0], sizes = [1, 32], strides = [1, 1]} : vector<2x32xf32> to vector<1x32xf32>
      %163 = vector.extract_strided_slice %161 {offsets = [1, 0], sizes = [1, 32], strides = [1, 1]} : vector<2x32xf32> to vector<1x32xf32>
      %cst_53 = arith.constant dense<0.000000e+00> : vector<2x16xf32>
      %164 = vector.multi_reduction <add>, %156, %cst_53 [2] : vector<2x16x32xf32> to vector<2x16xf32>
      %165 = vector.shape_cast %164 : vector<2x16xf32> to vector<2x16x1xf32>
      %cst_54 = arith.constant 3.200000e+01 : f32
      %166 = vector.broadcast %cst_54 : f32 to vector<2x16x1xf32>
      %167 = arith.divf %165, %166 : vector<2x16x1xf32>
      %168 = vector.broadcast %167 : vector<2x16x1xf32> to vector<2x16x32xf32>
      %169 = arith.subf %156, %168 : vector<2x16x32xf32>
      %170 = arith.mulf %169, %169 : vector<2x16x32xf32>
      %cst_55 = arith.constant dense<0.000000e+00> : vector<2x16xf32>
      %171 = vector.multi_reduction <add>, %170, %cst_55 [2] : vector<2x16x32xf32> to vector<2x16xf32>
      %172 = vector.shape_cast %171 : vector<2x16xf32> to vector<2x16x1xf32>
      %cst_56 = arith.constant 3.200000e+01 : f32
      %173 = vector.broadcast %cst_56 : f32 to vector<2x16x1xf32>
      %174 = arith.divf %172, %173 : vector<2x16x1xf32>
      %175 = vector.broadcast %167 : vector<2x16x1xf32> to vector<2x16x32xf32>
      %176 = arith.subf %156, %175 : vector<2x16x32xf32>
      %cst_57 = arith.constant 9.99999974E-6 : f32
      %177 = vector.broadcast %cst_57 : f32 to vector<2x16x1xf32>
      %178 = arith.addf %174, %177 : vector<2x16x1xf32>
      %179 = math.rsqrt %178 : vector<2x16x1xf32>
      %180 = vector.broadcast %179 : vector<2x16x1xf32> to vector<2x16x32xf32>
      %181 = arith.mulf %176, %180 : vector<2x16x32xf32>
      %182 = vector.shape_cast %162 : vector<1x32xf32> to vector<1x1x32xf32>
      %183 = vector.broadcast %182 : vector<1x1x32xf32> to vector<2x16x32xf32>
      %184 = arith.mulf %181, %183 : vector<2x16x32xf32>
      %185 = vector.shape_cast %163 : vector<1x32xf32> to vector<1x1x32xf32>
      %186 = vector.broadcast %185 : vector<1x1x32xf32> to vector<2x16x32xf32>
      %187 = arith.addf %184, %186 : vector<2x16x32xf32>
      %c0_58 = arith.constant 0 : index
      %c0_59 = arith.constant 0 : index
      %c0_60 = arith.constant 0 : index
      %188 = vector.load %arg10[%c0_58, %c0_59, %c0_60] : memref<2x16x32xf32, #tpu.memory_space<vmem>>, vector<2x16x32xf32>
      tpu.vector_store %arg10[%c0_58, %c0_59, %c0_60], %187 {strides = array<i32>} : memref<2x16x32xf32, #tpu.memory_space<vmem>>, vector<2x16x32xf32>,
    } else {
    }
    return
  }
  func.func @transform_0(%arg0: i32, %arg1: i32) -> (i32, i32, i32) {
    %c0_i32 = arith.constant 0 : i32
    %c0_i32_0 = arith.constant 0 : i32
    %c0_i32_1 = arith.constant 0 : i32
    return %arg0, %c0_i32, %c0_i32_0 : i32, i32, i32
  }
  func.func @transform_1(%arg0: i32, %arg1: i32) -> (i32, i32) {
    %c0_i32 = arith.constant 0 : i32
    %c0_i32_0 = arith.constant 0 : i32
    %c0_i32_1 = arith.constant 0 : i32
    return %c0_i32, %c0_i32_0 : i32, i32
  }
  func.func @transform_2(%arg0: i32, %arg1: i32) -> (i32, i32, i32) {
    %c0_i32 = arith.constant 0 : i32
    %c0_i32_0 = arith.constant 0 : i32
    %c0_i32_1 = arith.constant 0 : i32
    return %arg1, %c0_i32, %c0_i32_0 : i32, i32, i32
  }
  func.func @transform_3(%arg0: i32, %arg1: i32) -> (i32, i32, i32) {
    %c0_i32 = arith.constant 0 : i32
    %c0_i32_0 = arith.constant 0 : i32
    %c0_i32_1 = arith.constant 0 : i32
    return %arg1, %c0_i32, %c0_i32_0 : i32, i32, i32
  }
  func.func @transform_4(%arg0: i32, %arg1: i32) -> (i32, i32, i32) {
    %c0_i32 = arith.constant 0 : i32
    %c0_i32_0 = arith.constant 0 : i32
    %c0_i32_1 = arith.constant 0 : i32
    return %arg1, %c0_i32, %c0_i32_0 : i32, i32, i32
  }
  func.func @transform_5(%arg0: i32, %arg1: i32) -> (i32, i32, i32) {
    %c0_i32 = arith.constant 0 : i32
    %c0_i32_0 = arith.constant 0 : i32
    %c0_i32_1 = arith.constant 0 : i32
    return %arg1, %c0_i32, %c0_i32_0 : i32, i32, i32
  }
  func.func @transform_6(%arg0: i32, %arg1: i32) -> (i32, i32, i32) {
    %c0_i32 = arith.constant 0 : i32
    %c0_i32_0 = arith.constant 0 : i32
    %c0_i32_1 = arith.constant 0 : i32
    return %arg1, %c0_i32, %c0_i32_0 : i32, i32, i32
  }
  func.func @transform_7(%arg0: i32, %arg1: i32) -> (i32, i32) {
    %c0_i32 = arith.constant 0 : i32
    %c0_i32_0 = arith.constant 0 : i32
    %c0_i32_1 = arith.constant 0 : i32
    return %c0_i32, %c0_i32_0 : i32, i32
  }
  func.func @transform_8(%arg0: i32, %arg1: i32) -> (i32, i32, i32) {
    %c0_i32 = arith.constant 0 : i32
    %c0_i32_0 = arith.constant 0 : i32
    %c0_i32_1 = arith.constant 0 : i32
    return %arg0, %c0_i32, %c0_i32_0 : i32, i32, i32
  }
}

</mosaic_0001>

<bundles_post_ra>
// kernel: tpu_custom_call.1
= control target key start
LH: loop header
LB: loop body
LE: loop exit
PB: predicated region body
PF: predicated region fallthrough
CT: control target
= control target key end

     0   :  { %13 = vsyncpa [#allocation3], 0  ;;  %s1815_s27 = smov 0   ;;  %s1817_s28 = smov 0   ;;  %s2135_s0 = inlined_call_operand.vmem [shape: f32[2,16,32], index: 0, kind: input, shape index: {}]   ;;  %s2136_s1 = inlined_call_operand.vmem [shape: f32[1,16], index: 1, kind: input, shape index: {}]   ;;  %s2137_s2 = inlined_call_operand.vmem [shape: bf16[2,32,96], index: 2, kind: input, shape index: {}]   ;;  %s2138_s3 = inlined_call_operand.vmem [shape: bf16[2,32,32], index: 3, kind: input, shape index: {}]   ;;  %s2139_s4 = inlined_call_operand.vmem [shape: bf16[2,32,128], index: 4, kind: input, shape index: {}]   ;;  %s2140_s5 = inlined_call_operand.vmem [shape: bf16[2,128,32], index: 5, kind: input, shape index: {}]   ;;  %s2141_s6 = inlined_call_operand.vmem [shape: f32[2,8,128], index: 6, kind: input, shape index: {}]   ;;  %s2142_s7 = inlined_call_operand.vmem [shape: f32[2,32], index: 7, kind: input, shape index: {}]   ;;  %s2143_s8 = inlined_call_operand.hbm [shape: f32[2,16,32], index: 8, kind: output, shape index: {}]  }
   0x1   :  { %s1819_s29 = smov 0  }
   0x2 LB: > { %s1479_s30 = sadd.s32 4294967295, %s1758_s29   ;;  %s28_s9 = sadd.s32 1, %s1754_s28  ;;  %s1758_s29 = sphi %s1819_s29, %s19_s29   ;;  %s1754_s28 = sphi %s1817_s28, %s2145_s28   ;;  %s1750_s27 = sphi %s1815_s27, %s2144_s27  }
   0x3   : > { %p29_p0 = scmp.ge.s32.totalorder %s28_s9, 2  ;;  %p1483_p1 = scmp.ge.s32.totalorder %s1758_s29, 1 }
   0x4   : > { %p326_p2 = scmp.lt.s32.totalorder %s1758_s29, 3 }
   0x5   : > { %s2147_s9 = smov (%p29_p0, %s28_s9), 0 }
   0x6   : > { %p327_p3 = pnand %p1483_p1, %p326_p2 }
   0x7   : > { %p387_p4 = scmp.lt.s32.totalorder (!%p327_p3), %s1750_s27, 1  ;;  %p1493_p5 = scmp.ne.s32.totalorder (!%p327_p3), %s1750_s27, 0 }
   0x8   : > { %330 = sbr.rel (%p327_p3) target bundleno = 2274 (0x8e2), region = 52 }
   0xd   : > { %s388_s10 = scalar_select %p387_p4, %s1750_s27, 1 }
   0xf   : > { %s1569_s11 = sshll.u32 %s388_s10, 4  ;;  %s1572_s12 = sshll.u32 %s388_s10, 6 }
  0x10   : > { %s1841_s15 = scalar_lea.vmem %s2137_s2, %s1569_s11  ;;  %s1846_s18 = scalar_lea.vmem %s2138_s3, %s1569_s11 }
  0x11   : > { %s1851_s21 = scalar_lea.vmem %s2139_s4, %s1569_s11  ;;  %s1856_s24 = scalar_lea.vmem %s2140_s5, %s1572_s12 }
  0x12   : > { %s1492_s25 = sshll.u32 %s388_s10, 3  ;;  %416 = sbr.rel (%p1493_p5) target bundleno = 28 (0x1c), region = 56 }
  0x13   : > { %s1861_s14 = scalar_lea.vmem %s2141_s6, %s1492_s25 }
  0x17   : > { %v417_v0 = vld [vmem:[%s2135_s0] sm:$0xff]  ;;  %vm421_vm0 = vcmask 261120   ;;  %v418_v1 = vld [vmem:[%s2135_s0 + $0x8] sm:$0xff]  ;;  %v419_v2 = vld [vmem:[%s2135_s0 + $0x10] sm:$0xff] }
  0x18   : > { %422 = vst.msk [vmem:[#allocation2] sm:$0xff] %vm421_vm0, %v417_v0  ;;  %v420_v3 = vld [vmem:[%s2135_s0 + $0x18] sm:$0xff] }
  0x19   : > { %423 = vst.msk [vmem:[#allocation2 + $0x8] sm:$0xff] %vm421_vm0, %v418_v1 }
  0x1a   : > { %424 = vst.msk [vmem:[#allocation2 + $0x10] sm:$0xff] %vm421_vm0, %v419_v2 }
  0x1b   : > { %425 = vst.msk [vmem:[#allocation2 + $0x18] sm:$0xff] %vm421_vm0, %v420_v3 }
  0x1c PF: > { %vm432_vm1 = vcmask 261120   ;;  %v1760_v12 = vmov 32.0   ;;  %v1574_v39 = vld [vmem:[%s1841_s15 + $0x8] sm:$0xff]  ;;  %v1573_v43 = vld [vmem:[%s1841_s15] sm:$0xff]  ;;  %s1761_s15 = smov 80   ;;  %s1762_s23 = smov 96  }
  0x1d   : > { %1638 = vrcp.f32 %v1760_v12  ;;  %569 = vmatpush.bf16.msra.mxu0 %v1574_v39  ;;  %s1763_s25 = smov 112   ;;  %vm593_vm15 = vcmask 130048   ;;  %s1765_s16 = smov 48  }
  0x1e   : > { %s1766_s17 = smov 16   ;;  %p1564_p6 = scmp.ne.s32.totalorder %s1750_s27, 1 }
  0x1f   : > { %v1878_v5 = vld [vmem:[#allocation2] sm:$0xff] }
  0x20   : > { %v433_v7 = vsel %vm432_vm1, %v1878_v5, 0.0  ;;  %v1886_v9 = vld [vmem:[#allocation2 + $0x8] sm:$0xff] }
  0x21   : > { %v1876_v4 = vld [vmem:[#allocation2 + $0x10] sm:$0xff]  ;;  %434 = vadd.xlane.f32.xlu0 %v433_v7  ;;  %v436_v11 = vsel %vm432_vm1, %v1886_v9, 0.0  ;;  %570 = vmatpush.bf16.msra.mxu0 %v1573_v43 }
  0x22   : > { %v439_v6 = vsel %vm432_vm1, %v1876_v4, 0.0  ;;  %v1884_v8 = vld [vmem:[#allocation2 + $0x18] sm:$0xff] }
  0x23   : > { %440 = vadd.xlane.f32.xlu1 %v439_v6  ;;  %v442_v10 = vsel %vm432_vm1, %v1884_v8, 0.0  ;;  %v1639_v13 = vpop.eup %1638 }
  0x24   : > { %v446_v14 = vmul.f32 32.0, %v1639_v13  ;;  %vm450_vm2 = vweird.f32 %v1639_v13 }
  0x26   : > { %v447_v15 = vsub.f32 1.0, %v446_v14 }
  0x28   : > { %v448_v16 = vmul.f32 %v1639_v13, %v447_v15 }
  0x29   : > { %437 = vadd.xlane.f32.xlu0 %v436_v11 }
  0x2a   : > { %v449_v17 = vadd.f32 %v1639_v13, %v448_v16 }
  0x2b   : > { %443 = vadd.xlane.f32.xlu1 %v442_v10  ;;  %v1925_v10 = vld [vmem:[%s1861_s14] sm:$0xff]  ;;  %s1764_s14 = smov 64  }
  0x2c   : > { %v1892_v18 = vsel %vm450_vm2, %v1639_v13, %v449_v17  ;;  %v528_v14 = vperm.slane %v1925_v10, 0 }
  0x94   : > { %v435_v20 = vpop.xlane.xlu0 %434 }
  0x95   : > { %v452_v22 = vmul.f32 %v1892_v18, %v435_v20 }
  0x96   : > { %v441_v19 = vpop.xlane.xlu1 %440 }
  0x97   : > { %v454_v21 = vmul.f32 %v1892_v18, %v441_v19  ;;  %v1900_v24 = vsub.f32 %v1878_v5, %v452_v22  ;;  %v533_v22 = vperm.slane %v1925_v10, 1 }
  0x99   : > { %v1897_v23 = vsub.f32 %v1876_v4, %v454_v21  ;;  %v460_v26 = vmul.f32 %v1900_v24, %v1900_v24 }
  0x9b   : > { %v462_v25 = vmul.f32 %v1897_v23, %v1897_v23  ;;  %v464_v28 = vsel %vm432_vm1, %v460_v26, 0.0 }
  0x9c   : > { %465 = vadd.xlane.f32.xlu2 %v464_v28  ;;  %v438_v30 = vpop.xlane.xlu0 %437 }
  0x9d   : > { %v470_v27 = vsel %vm432_vm1, %v462_v25, 0.0  ;;  %v453_v32 = vmul.f32 %v1892_v18, %v438_v30 }
  0x9e   : > { %v444_v29 = vpop.xlane.xlu1 %443  ;;  %471 = vadd.xlane.f32.xlu0 %v470_v27 }
  0x9f   : > { %v455_v31 = vmul.f32 %v1892_v18, %v444_v29  ;;  %v457_v34 = vsub.f32 %v1886_v9, %v453_v32 }
  0xa1   : > { %v1911_v33 = vsub.f32 %v1884_v8, %v455_v31  ;;  %v461_v36 = vmul.f32 %v457_v34, %v457_v34 }
  0xa3   : > { %v463_v35 = vmul.f32 %v1911_v33, %v1911_v33  ;;  %v467_v38 = vsel %vm432_vm1, %v461_v36, 0.0 }
  0xa4   : > { %468 = vadd.xlane.f32.xlu2 %v467_v38 }
  0xa5   : > { %v473_v37 = vsel %vm432_vm1, %v463_v35, 0.0 }
  0xa6   : > { %474 = vadd.xlane.f32.xlu1 %v473_v37 }
 0x10f   : > { %v466_v40 = vpop.xlane.xlu2 %465 }
 0x110   : > { %v476_v41 = vmul.f32 %v466_v40, %v1892_v18 }
 0x111   : > { %v472_v42 = vpop.xlane.xlu0 %471 }
 0x112   : > { %v480_v44 = vadd.f32 1e-05, %v476_v41  ;;  %v478_v45 = vmul.f32 %v472_v42, %v1892_v18  ;;  %v544_v42 = vperm.slane %v1925_v10, 4 }
 0x114   : > { %1640 = vrsqrt.f32 %v480_v44  ;;  %v482_v46 = vadd.f32 1e-05, %v478_v45  ;;  %vm490_vm4 = vweird.f32 %v480_v44 }
 0x116   : > { %1642 = vrsqrt.f32 %v482_v46  ;;  %vm510_vm11 = vweird.f32 %v482_v46 }
 0x117   : > { %v469_v48 = vpop.xlane.xlu2 %468 }
 0x118   : > { %v477_v50 = vmul.f32 %v469_v48, %v1892_v18 }
 0x119   : > { %v475_v47 = vpop.xlane.xlu1 %474 }
 0x11a   : > { %v479_v49 = vmul.f32 %v475_v47, %v1892_v18  ;;  %v1641_v51 = vpop.eup %1640  ;;  %v481_v53 = vadd.f32 1e-05, %v477_v50 }
 0x11b   : > { %v485_v54 = vmul.f32 %v1641_v51, %v480_v44  ;;  %vm491_vm3 = vweird.f32 %v1641_v51 }
 0x11c   : > { %v483_v52 = vadd.f32 1e-05, %v479_v49  ;;  %v1643_v57 = vpop.eup %1642  ;;  %vm492_vm5 = vmor %vm490_vm4, %vm491_vm3  ;;  %vm500_vm7 = vweird.f32 %v481_v53 }
 0x11d   : > { %v486_v55 = vmul.f32 %v1641_v51, %v485_v54  ;;  %v505_v63 = vmul.f32 %v1643_v57, %v482_v46  ;;  %vm511_vm12 = vweird.f32 %v1643_v57 }
 0x11e   : > { %1644 = vrsqrt.f32 %v483_v52  ;;  %vm520_vm9 = vweird.f32 %v483_v52  ;;  %vm512_vm14 = vmor %vm510_vm11, %vm511_vm12 }
 0x11f   : > { %1646 = vrsqrt.f32 %v481_v53  ;;  %v487_v56 = vmul.f32 0.5, %v486_v55  ;;  %v506_v6 = vmul.f32 %v1643_v57, %v505_v63 }
 0x121   : > { %v488_v58 = vsub.f32 1.5, %v487_v56  ;;  %v507_v15 = vmul.f32 0.5, %v506_v6  ;;  %v1637_v6 = vld [vmem:[%s2136_s1] ss:$0 sm:$0xff] }
 0x123   : > { %v489_v62 = vmul.f32 %v1641_v51, %v488_v58  ;;  %v508_v25 = vsub.f32 1.5, %v507_v15 }
 0x124   : > { %v1645_v59 = vpop.eup %1644 }
 0x125   : > { %v1647_v60 = vpop.eup %1646  ;;  %v515_v61 = vmul.f32 %v1645_v59, %v483_v52  ;;  %v493_v3 = vsel %vm492_vm5, %v1641_v51, %v489_v62  ;;  %vm521_vm10 = vweird.f32 %v1645_v59  ;;  %v509_v29 = vmul.f32 %v1643_v57, %v508_v25 }
 0x126   : > { %v495_v0 = vmul.f32 %v1647_v60, %v481_v53  ;;  %vm501_vm6 = vweird.f32 %v1647_v60  ;;  %v524_v13 = vmul.f32 %v493_v3, %v1900_v24  ;;  %vm522_vm13 = vmor %vm520_vm9, %vm521_vm10 }
 0x127   : > { %v516_v1 = vmul.f32 %v1645_v59, %v515_v61  ;;  %vm502_vm8 = vmor %vm500_vm7, %vm501_vm6  ;;  %v513_v32 = vsel %vm512_vm14, %v1643_v57, %v509_v29 }
 0x128   : > { %v496_v2 = vmul.f32 %v1647_v60, %v495_v0  ;;  %v529_v21 = vmul.f32 %v528_v14, %v524_v13  ;;  %v526_v35 = vmul.f32 %v513_v32, %v1897_v23 }
 0x129   : > { %v517_v11 = vmul.f32 0.5, %v516_v1 }
 0x12a   : > { %v497_v7 = vmul.f32 0.5, %v496_v2  ;;  %v534_v24 = vadd.f32 %v533_v22, %v529_v21  ;;  %v531_v37 = vmul.f32 %v528_v14, %v526_v35 }
 0x12b   : > { %v518_v17 = vsub.f32 1.5, %v517_v11 }
 0x12c   : > { %v498_v12 = vsub.f32 1.5, %v497_v7  ;;  %v536_v39 = vadd.f32 %v533_v22, %v531_v37 }
 0x12d   : > { %v519_v27 = vmul.f32 %v1645_v59, %v518_v17 }
 0x12e   : > { %v499_v16 = vmul.f32 %v1647_v60, %v498_v12 }
 0x12f   : > { %v523_v31 = vsel %vm522_vm13, %v1645_v59, %v519_v27 }
 0x130   : > { %v503_v19 = vsel %vm502_vm8, %v1647_v60, %v499_v16 }
 0x131   : > { %v525_v20 = vmul.f32 %v503_v19, %v457_v34  ;;  %v527_v34 = vmul.f32 %v523_v31, %v1911_v33 }
 0x133   : > { %v530_v26 = vmul.f32 %v528_v14, %v525_v20  ;;  %v532_v36 = vmul.f32 %v528_v14, %v527_v34 }
 0x135   : > { %v535_v28 = vadd.f32 %v533_v22, %v530_v26  ;;  %v537_v38 = vadd.f32 %v533_v22, %v532_v36 }
 0x137   : > { %v538_v30 = vpack.c.bf16 %v535_v28, %v534_v24  ;;  %v539_v40 = vpack.c.bf16 %v537_v38, %v536_v39 }
 0x139   : > { %1502 = vmatmul.msk.bf16.vlgmr.msra.gmra.mxu0 %vm432_vm1, %v538_v30 }
 0x149   : > { %1503 = vmatmul.msk.bf16.gmra.mxu0 %vm432_vm1, %v539_v40 }
 0x1b6   : > { %v572_v41 = vpop.f32.mrf.mxu0 }
 0x1b7   : > { %v573_v43 = vadd.f32 %v572_v41, %v544_v42 }
 0x1b9   : > { %v582_v45 = vpack.c.bf16 %v573_v43, %v573_v43 }
 0x1bb   : > { %v588_v48 = vunpack.c.l.b16 %v582_v45 }
 0x1be   : > { %v574_v44 = vpop.f32.mrf.mxu0 }
 0x1bf   : > { %v575_v46 = vadd.f32 %v574_v44, %v544_v42 }
 0x1c1   : > { %v583_v47 = vpack.c.bf16 %v575_v46, %v575_v46 }
 0x1c3   : > { %v589_v49 = vunpack.c.l.b16 %v583_v47 }
 0x1c5   : > { %v1935_v33 = vpack.c.b16 %v589_v49, %v588_v48 }
 0x1c6   : > { %v577_v23 = vpop.f32.mrf.mxu0 }
 0x1c7   : > { %752 = vrot.lane.b32.xlu1 %v1935_v33, %s1761_s15  ;;  %591 = vrot.lane.b32.xlu0 %v1935_v33, %s1762_s23  ;;  %v578_v50 = vadd.f32 %v577_v23, %v544_v42 }
 0x1c9   : > { %v584_v52 = vpack.c.bf16 %v578_v50, %v578_v50 }
 0x1cb   : > { %v616_v55 = vunpack.c.l.b16 %v584_v52 }
 0x1ce   : > { %v579_v51 = vpop.f32.mrf.mxu0 }
 0x1cf   : > { %v580_v53 = vadd.f32 %v579_v51, %v544_v42 }
 0x1d1   : > { %v585_v54 = vpack.c.bf16 %v580_v53, %v580_v53 }
 0x1d3   : > { %v617_v56 = vunpack.c.l.b16 %v585_v54 }
 0x1d5   : > { %v1939_v57 = vpack.c.b16 %v617_v56, %v616_v55 }
 0x1d7   : > { %776 = vrot.lane.b32.xlu0 %v1939_v57, %s1761_s15  ;;  %619 = vrot.lane.b32.xlu2 %v1939_v57, %s1762_s23 }
 0x1df   : > { %750 = vrot.lane.b32.xlu2 %v1935_v33, %s1763_s25 }
 0x1e7   : > { %774 = vrot.lane.b32.xlu2 %v1939_v57, %s1763_s25 }
 0x231   : > { %v620_v58 = vpop.permute.xlu2 %619 }
 0x232   : > { %v625_v59 = vsel %vm593_vm15, %v620_v58, 0 }
 0x233   : > { %634 = vmatpush.bf16.xpose.msra.mxu2 %v625_v59 }
 0x239   : > { %v753_v60 = vpop.permute.xlu1 %752  ;;  %v592_v61 = vpop.permute.xlu0 %591 }
 0x23a   : > { %1505 = vmatmul.msk.bf16.vlgmr.msra.gmra.mxu2 %vm593_vm15, %v1939_v57  ;;  %v758_v62 = vsel %vm593_vm15, %v753_v60, 0  ;;  %v598_v63 = vsel %vm593_vm15, %v592_v61, 0  ;;  %v751_v0 = vpop.permute.xlu2 %750 }
 0x23b   : > { %607 = vmatpush.bf16.xpose.msra.mxu1 %v598_v63 }
 0x242   : > { %1504 = vmatmul.msk.bf16.vlgmr.msra.gmra.mxu1 %vm593_vm15, %v1935_v33  ;;  %v775_v3 = vpop.permute.xlu2 %774 }
 0x243   : > { %767 = vmatpush.bf16.xpose.msrb.mxu1 %v758_v62 }
 0x249   : > { %v777_v1 = vpop.permute.xlu0 %776 }
 0x24a   : > { %v782_v2 = vsel %vm593_vm15, %v777_v1, 0 }
 0x24b   : > { %791 = vmatpush.bf16.xpose.msrb.mxu2 %v782_v2 }
 0x252   : > { %1509 = vmatmul.msk.bf16.vlgmr.msrb.gmra.mxu2 %vm593_vm15, %v775_v3  ;;  %1508 = vmatmul.msk.bf16.vlgmr.msrb.gmra.mxu1 %vm593_vm15, %v751_v0 }
 0x2bd   : > { %v636_v7 = vpop.f32.mrf.mxu2 }
 0x2be   : > { %v643_v11 = vmul.f32 0.25, %v636_v7 }
 0x2bf   : > { %v609_v12 = vpop.f32.mrf.mxu1 }
 0x2c0   : > { %v650_v13 = vadd.f32 %v1637_v6, %v643_v11  ;;  %v641_v14 = vmul.f32 0.25, %v609_v12 }
 0x2c2   : > { %v658_v15 = vsel %vm593_vm15, %v650_v13, -inf  ;;  %v648_v16 = vadd.f32 %v1637_v6, %v641_v14 }
 0x2c3   : > { %659 = vmax.xlane.f32.xlu1 %v658_v15 }
 0x2c4   : > { %v652_v19 = vsel %vm593_vm15, %v648_v16, -inf }
 0x2c5   : > { %v638_v17 = vpop.f32.mrf.mxu2  ;;  %653 = vmax.xlane.f32.xlu0 %v652_v19 }
 0x2c6   : > { %v644_v20 = vmul.f32 0.25, %v638_v17 }
 0x2c7   : > { %v611_v21 = vpop.f32.mrf.mxu1 }
 0x2c8   : > { %v651_v22 = vadd.f32 %v1637_v6, %v644_v20  ;;  %v642_v28 = vmul.f32 0.25, %v611_v21 }
 0x2ca   : > { %v661_v25 = vsel %vm593_vm15, %v651_v22, -inf  ;;  %v649_v32 = vadd.f32 %v1637_v6, %v642_v28 }
 0x2cc   : > { %v655_v38 = vsel %vm593_vm15, %v649_v32, -inf }
 0x2cd   : > { %662 = vmax.xlane.f32.xlu0 %v661_v25 }
 0x2cf   : > { %v769_v26 = vpop.f32.mrf.mxu1 }
 0x2d0   : > { %v798_v27 = vmul.f32 0.25, %v769_v26 }
 0x2d2   : > { %v802_v24 = vadd.f32 %v1637_v6, %v798_v27 }
 0x2d4   : > { %v806_v29 = vsel %vm593_vm15, %v802_v24, -inf }
 0x2d5   : > { %807 = vmax.xlane.f32.xlu2 %v806_v29  ;;  %v793_v34 = vpop.f32.mrf.mxu2 }
 0x2d6   : > { %v800_v36 = vmul.f32 0.25, %v793_v34 }
 0x2d7   : > { %v771_v30 = vpop.f32.mrf.mxu1 }
 0x2d8   : > { %v799_v31 = vmul.f32 0.25, %v771_v30  ;;  %v804_v39 = vadd.f32 %v1637_v6, %v800_v36 }
 0x2da   : > { %v803_v35 = vadd.f32 %v1637_v6, %v799_v31  ;;  %v812_v40 = vsel %vm593_vm15, %v804_v39, -inf }
 0x2dc   : > { %v809_v37 = vsel %vm593_vm15, %v803_v35, -inf }
 0x2dd   : > { %810 = vmax.xlane.f32.xlu1 %v809_v37  ;;  %656 = vmax.xlane.f32.xlu2 %v655_v38  ;;  %v795_v41 = vpop.f32.mrf.mxu2 }
 0x2de   : > { %v801_v42 = vmul.f32 0.25, %v795_v41 }
 0x2e0   : > { %v805_v43 = vadd.f32 %v1637_v6, %v801_v42 }
 0x2e1   : > { %730 = vrot.lane.b32.xlu0 %v1939_v57, %s1764_s14 }
 0x2e2   : > { %v815_v44 = vsel %vm593_vm15, %v805_v43, -inf }
 0x2e5   : > { %813 = vmax.xlane.f32.xlu1 %v812_v40 }
 0x30b   : > { %816 = vmax.xlane.f32.xlu0 %v815_v44 }
 0x31f   : > { %705 = vrot.lane.b32.xlu0 %v1935_v33, %s1764_s14 }
 0x336   : > { %v660_v23 = vpop.xlane.xlu1 %659 }
 0x337   : > { %v666_v52 = vsub.f32 %v650_v13, %v660_v23 }
 0x338   : > { %v654_v45 = vpop.xlane.xlu0 %653 }
 0x339   : > { %v664_v46 = vsub.f32 %v648_v16, %v654_v45  ;;  %v672_v55 = vmul.f32 1.442695, %v666_v52 }
 0x33b   : > { %v668_v47 = vmul.f32 1.442695, %v664_v46 }
 0x33d   : > { %1648 = vpow2.f32 %v668_v47 }
 0x340   : > { %v663_v53 = vpop.xlane.xlu0 %662 }
 0x341   : > { %v667_v60 = vsub.f32 %v651_v22, %v663_v53 }
 0x343   : > { %v1968_v48 = vpop.eup %1648  ;;  %v674_v0 = vmul.f32 1.442695, %v667_v60 }
 0x344   : > { %v676_v49 = vsel %vm593_vm15, %v1968_v48, 0.0 }
 0x345   : > { %677 = vadd.xlane.f32.xlu2 %v676_v49 }
 0x348   : > { %v808_v50 = vpop.xlane.xlu2 %807 }
 0x349   : > { %v818_v51 = vsub.f32 %v802_v24, %v808_v50 }
 0x34b   : > { %v822_v54 = vmul.f32 1.442695, %v818_v51 }
 0x34d   : > { %1650 = vpow2.f32 %v822_v54 }
 0x34e   : > { %1652 = vpow2.f32 %v672_v55 }
 0x350   : > { %v811_v56 = vpop.xlane.xlu1 %810  ;;  %v657_v1 = vpop.xlane.xlu2 %656 }
 0x351   : > { %v819_v58 = vsub.f32 %v803_v35, %v811_v56  ;;  %v665_v6 = vsub.f32 %v649_v32, %v657_v1 }
 0x353   : > { %v1972_v59 = vpop.eup %1650  ;;  %v824_v61 = vmul.f32 1.442695, %v819_v58  ;;  %v731_v62 = vpop.permute.xlu0 %730  ;;  %v670_v12 = vmul.f32 1.442695, %v665_v6 }
 0x354   : > { %743 = vmatpush.bf16.msra.mxu3 %v731_v62  ;;  %v830_v63 = vsel %vm593_vm15, %v1972_v59, 0.0  ;;  %v1653_v2 = vpop.eup %1652 }
 0x355   : > { %1654 = vpow2.f32 %v824_v61  ;;  %831 = vadd.xlane.f32.xlu2 %v830_v63  ;;  %v682_v11 = vsel %vm593_vm15, %v1653_v2, 0.0 }
 0x356   : > { %1656 = vpow2.f32 %v674_v0 }
 0x357   : > { %1658 = vpow2.f32 %v670_v12 }
 0x358   : > { %v814_v13 = vpop.xlane.xlu1 %813 }
 0x359   : > { %v820_v15 = vsub.f32 %v804_v39, %v814_v13 }
 0x35b   : > { %v1976_v3 = vpop.eup %1654  ;;  %v826_v17 = vmul.f32 1.442695, %v820_v15 }
 0x35c   : > { %v833_v7 = vsel %vm593_vm15, %v1976_v3, 0.0  ;;  %v1657_v14 = vpop.eup %1656 }
 0x35d   : > { %834 = vadd.xlane.f32.xlu1 %v833_v7  ;;  %683 = vadd.xlane.f32.xlu2 %v682_v11  ;;  %v685_v16 = vsel %vm593_vm15, %v1657_v14, 0.0  ;;  %v1659_v19 = vpop.eup %1658  ;;  %1660 = vpow2.f32 %v826_v17 }
 0x35e   : > { %v679_v20 = vsel %vm593_vm15, %v1659_v19, 0.0 }
 0x363   : > { %v1983_v21 = vpop.eup %1660 }
 0x364   : > { %v836_v22 = vsel %vm593_vm15, %v1983_v21, 0.0 }
 0x365   : > { %686 = vadd.xlane.f32.xlu1 %v685_v16 }
 0x36d   : > { %680 = vadd.xlane.f32.xlu1 %v679_v20 }
 0x375   : > { %859 = vrot.lane.b32.xlu2 %v1935_v33, %s1765_s16  ;;  %837 = vadd.xlane.f32.xlu1 %v836_v22 }
 0x37e   : > { %v817_v25 = vpop.xlane.xlu0 %816 }
 0x37f   : > { %v821_v26 = vsub.f32 %v805_v43, %v817_v25 }
 0x381   : > { %v828_v27 = vmul.f32 1.442695, %v821_v26 }
 0x383   : > { %1662 = vpow2.f32 %v828_v27 }
 0x389   : > { %v1663_v24 = vpop.eup %1662 }
 0x38a   : > { %v839_v28 = vsel %vm593_vm15, %v1663_v24, 0.0 }
 0x38b   : > { %840 = vadd.xlane.f32.xlu0 %v839_v28 }
 0x38e   : > { %884 = vrot.lane.b32.xlu1 %v1939_v57, %s1765_s16 }
 0x391   : > { %v706_v29 = vpop.permute.xlu0 %705 }
 0x392   : > { %718 = vmatpush.bf16.msrb.mxu0 %v706_v29  ;;  %v1575_v29 = vld [vmem:[%s1846_s18] sm:$0xff] }
 0x3b8   : > { %v678_v30 = vpop.xlane.xlu2 %677 }
 0x3c8   : > { %v832_v31 = vpop.xlane.xlu2 %831 }
 0x3d0   : > { %v835_v32 = vpop.xlane.xlu1 %834  ;;  %v684_v34 = vpop.xlane.xlu2 %683 }
 0x3d1   : > { %1664 = vrcp.f32 %v684_v34 }
 0x3d7   : > { %v1665_v36 = vpop.eup %1664 }
 0x3d8   : > { %v860_v35 = vpop.permute.xlu2 %859  ;;  %v687_v33 = vpop.xlane.xlu1 %686  ;;  %v694_v37 = vmul.f32 %v1665_v36, %v1653_v2 }
 0x3d9   : > { %1666 = vrcp.f32 %v687_v33  ;;  %872 = vmatpush.bf16.msrb.mxu3 %v860_v35 }
 0x3da   : > { %1668 = vrcp.f32 %v678_v30  ;;  %v698_v41 = vpack.c.bf16 %v694_v37, %v694_v37 }
 0x3db   : > { %1670 = vrcp.f32 %v835_v32 }
 0x3dc   : > { %v727_v44 = vunpack.c.l.b16 %v698_v41 }
 0x3df   : > { %v1667_v38 = vpop.eup %1666 }
 0x3e0   : > { %v681_v39 = vpop.xlane.xlu1 %680  ;;  %v695_v40 = vmul.f32 %v1667_v38, %v1657_v14  ;;  %v1669_v57 = vpop.eup %1668 }
 0x3e1   : > { %1672 = vrcp.f32 %v681_v39  ;;  %v692_v43 = vmul.f32 %v1669_v57, %v1968_v48  ;;  %v1671_v46 = vpop.eup %1670  ;;  %v930_v57 = vperm.slane %v1925_v10, 5 }
 0x3e2   : > { %v699_v42 = vpack.c.bf16 %v695_v40, %v695_v40  ;;  %1674 = vrcp.f32 %v832_v31  ;;  %v847_v52 = vmul.f32 %v1671_v46, %v1976_v3 }
 0x3e3   : > { %v696_v23 = vpack.c.bf16 %v692_v43, %v692_v43 }
 0x3e4   : > { %v728_v45 = vunpack.c.l.b16 %v699_v42  ;;  %v851_v58 = vpack.c.bf16 %v847_v52, %v847_v52 }
 0x3e5   : > { %v702_v54 = vunpack.c.l.b16 %v696_v23 }
 0x3e6   : > { %v729_v47 = vpack.c.b16 %v728_v45, %v727_v44  ;;  %v857_v61 = vunpack.c.l.b16 %v851_v58 }
 0x3e7   : > { %v1673_v49 = vpop.eup %1672 }
 0x3e8   : > { %v693_v50 = vmul.f32 %v1673_v49, %v1659_v19  ;;  %1507 = vmatmul.msk.bf16.vlgmr.msra.gmra.mxu3 %vm593_vm15, %v729_v47  ;;  %v1675_v51 = vpop.eup %1674  ;;  %v838_v63 = vpop.xlane.xlu1 %837  ;;  %v1576_v19 = vld [vmem:[%s1846_s18 + $0x8] sm:$0xff] }
 0x3e9   : > { %v846_v55 = vmul.f32 %v1675_v51, %v1972_v59  ;;  %1676 = vrcp.f32 %v838_v63  ;;  %955 = vmatpush.bf16.msra.mxu1 %v1576_v19 }
 0x3ea   : > { %v697_v53 = vpack.c.bf16 %v693_v50, %v693_v50 }
 0x3eb   : > { %v850_v48 = vpack.c.bf16 %v846_v55, %v846_v55 }
 0x3ec   : > { %v703_v56 = vunpack.c.l.b16 %v697_v53 }
 0x3ed   : > { %v856_v62 = vunpack.c.l.b16 %v850_v48  ;;  %956 = vmatpush.bf16.msra.mxu1 %v1575_v29 }
 0x3ee   : > { %v704_v60 = vpack.c.b16 %v703_v56, %v702_v54 }
 0x3ef   : > { %v858_v0 = vpack.c.b16 %v857_v61, %v856_v62  ;;  %v1677_v2 = vpop.eup %1676 }
 0x3f0   : > { %1506 = vmatmul.msk.bf16.vlgmr.msrb.gmra.mxu0 %vm593_vm15, %v704_v60  ;;  %v848_v59 = vmul.f32 %v1677_v2, %v1983_v21 }
 0x3f2   : > { %v852_v7 = vpack.c.bf16 %v848_v59, %v848_v59 }
 0x3f4   : > { %v881_v13 = vunpack.c.l.b16 %v852_v7 }
 0x3f8   : > { %1510 = vmatmul.msk.bf16.vlgmr.msrb.gmra.mxu3 %vm593_vm15, %v858_v0 }
 0x3fe   : > { %v841_v1 = vpop.xlane.xlu0 %840 }
 0x3ff   : > { %1678 = vrcp.f32 %v841_v1 }
 0x400   : > { %v885_v3 = vpop.permute.xlu1 %884 }
 0x401   : > { %897 = vmatpush.bf16.msra.mxu0 %v885_v3 }
 0x405   : > { %v1679_v6 = vpop.eup %1678 }
 0x406   : > { %v849_v11 = vmul.f32 %v1679_v6, %v1663_v24 }
 0x408   : > { %v853_v12 = vpack.c.bf16 %v849_v11, %v849_v11 }
 0x40a   : > { %v882_v14 = vunpack.c.l.b16 %v853_v12 }
 0x40c   : > { %v883_v15 = vpack.c.b16 %v882_v14, %v881_v13 }
 0x40e   : > { %1511 = vmatmul.msk.bf16.vlgmr.msra.gmra.mxu0 %vm593_vm15, %v883_v15  ;;  %v1578_v15 = vld [vmem:[%s1851_s21 + $0x8] sm:$0xff] }
 0x40f   : > { %1101 = vmatpush.bf16.msra.mxu2 %v1578_v15 }
 0x46b   : > { %v745_v16 = vpop.f32.mrf.mxu3 }
 0x46d   : > { %v720_v20 = vpop.f32.mrf.mxu0 }
 0x473   : > { %v747_v17 = vpop.f32.mrf.mxu3 }
 0x475   : > { %v722_v25 = vpop.f32.mrf.mxu0 }
 0x47b   : > { %v874_v22 = vpop.f32.mrf.mxu3 }
 0x483   : > { %v876_v26 = vpop.f32.mrf.mxu3 }
 0x484   : > { %v1627_v27 = vpack.i.bf16 %v876_v26, %v874_v22 }
 0x486   : > { %1628 = vrot.lane.b32.xlu2 %v1627_v27, %s1766_s17 }
 0x48b   : > { %v899_v21 = vpop.f32.mrf.mxu0 }
 0x493   : > { %v901_v24 = vpop.f32.mrf.mxu0 }
 0x494   : > { %v1632_v28 = vpack.i.bf16 %v901_v24, %v899_v21 }
 0x496   : > { %1633 = vrot.lane.b32.xlu2 %v1632_v28, %s1766_s17 }
 0x4e0   : > { %v1629_v30 = vpop.permute.xlu2 %1628 }
 0x4e1   : > { %v1631_v31 = vunpack.i.h.bf16 %v1629_v30  ;;  %v1630_v32 = vunpack.i.l.bf16 %v1629_v30 }
 0x4e3   : > { %v920_v34 = vsel %vm593_vm15, %v720_v20, %v1630_v32  ;;  %v921_v35 = vsel %vm593_vm15, %v722_v25, %v1631_v31  ;;  %v1577_v20 = vld [vmem:[%s1851_s21] sm:$0xff] }
 0x4e4   : > { %v924_v33 = vpack.c.bf16 %v921_v35, %v920_v34  ;;  %1102 = vmatpush.bf16.msra.mxu2 %v1577_v20  ;;  %v1583_v20 = vld [vmem:[%s1856_s24 + $0x20] sm:$0xff] }
 0x4e6   : > { %1520 = vmatmul.msk.bf16.vlgmr.msra.gmra.mxu1 %vm432_vm1, %v924_v33 }
 0x4f0   : > { %v1634_v36 = vpop.permute.xlu2 %1633 }
 0x4f1   : > { %v1636_v37 = vunpack.i.h.bf16 %v1634_v36  ;;  %v1635_v38 = vunpack.i.l.bf16 %v1634_v36 }
 0x4f3   : > { %v922_v39 = vsel %vm593_vm15, %v745_v16, %v1635_v38  ;;  %v923_v40 = vsel %vm593_vm15, %v747_v17, %v1636_v37 }
 0x4f4   : > { %v925_v41 = vpack.c.bf16 %v923_v40, %v922_v39 }
 0x4f6   : > { %1521 = vmatmul.msk.bf16.gmra.mxu1 %vm432_vm1, %v925_v41 }
 0x563   : > { %v958_v42 = vpop.f32.mrf.mxu1 }
 0x564   : > { %v959_v43 = vadd.f32 %v958_v42, %v930_v57  ;;  %v1060_v42 = vperm.slane %v1925_v10, 2 }
 0x566   : > { %v2008_v44 = vadd.f32 %v959_v43, %v1878_v5 }
 0x568   : > { %v972_v45 = vsel %vm432_vm1, %v2008_v44, 0.0 }
 0x569   : > { %973 = vadd.xlane.f32.xlu1 %v972_v45 }
 0x56b   : > { %v960_v46 = vpop.f32.mrf.mxu1 }
 0x56c   : > { %v961_v47 = vadd.f32 %v960_v46, %v930_v57 }
 0x56e   : > { %v2013_v49 = vadd.f32 %v961_v47, %v1886_v9 }
 0x570   : > { %v975_v23 = vsel %vm432_vm1, %v2013_v49, 0.0 }
 0x571   : > { %976 = vadd.xlane.f32.xlu2 %v975_v23 }
 0x573   : > { %v963_v50 = vpop.f32.mrf.mxu1 }
 0x574   : > { %v964_v51 = vadd.f32 %v963_v50, %v930_v57 }
 0x576   : > { %v2018_v52 = vadd.f32 %v964_v51, %v1876_v4  ;;  %v1065_v51 = vperm.slane %v1925_v10, 3 }
 0x578   : > { %v978_v5 = vsel %vm432_vm1, %v2018_v52, 0.0 }
 0x579   : > { %979 = vadd.xlane.f32.xlu0 %v978_v5 }
 0x57b   : > { %v965_v53 = vpop.f32.mrf.mxu1 }
 0x57c   : > { %v966_v54 = vadd.f32 %v965_v53, %v930_v57 }
 0x57e   : > { %v2023_v55 = vadd.f32 %v966_v54, %v1884_v8 }
 0x580   : > { %v981_v9 = vsel %vm432_vm1, %v2023_v55, 0.0 }
 0x581   : > { %982 = vadd.xlane.f32.xlu0 %v981_v9 }
 0x5dc   : > { %v974_v56 = vpop.xlane.xlu1 %973 }
 0x5dd   : > { %v984_v58 = vmul.f32 %v974_v56, %v1892_v18 }
 0x5df   : > { %v988_v60 = vsub.f32 %v2008_v44, %v984_v58 }
 0x5e1   : > { %v992_v4 = vmul.f32 %v988_v60, %v988_v60 }
 0x5e3   : > { %v996_v48 = vsel %vm432_vm1, %v992_v4, 0.0 }
 0x5e4   : > { %v977_v61 = vpop.xlane.xlu2 %976  ;;  %997 = vadd.xlane.f32.xlu0 %v996_v48 }
 0x5e5   : > { %v985_v62 = vmul.f32 %v977_v61, %v1892_v18 }
 0x5e7   : > { %v2032_v63 = vsub.f32 %v2013_v49, %v985_v62 }
 0x5e9   : > { %v993_v8 = vmul.f32 %v2032_v63, %v2032_v63 }
 0x5eb   : > { %v999_v0 = vsel %vm432_vm1, %v993_v8, 0.0 }
 0x5ec   : > { %1000 = vadd.xlane.f32.xlu0 %v999_v0  ;;  %v980_v1 = vpop.xlane.xlu0 %979 }
 0x5ed   : > { %v986_v2 = vmul.f32 %v980_v1, %v1892_v18 }
 0x5ef   : > { %v2039_v3 = vsub.f32 %v2018_v52, %v986_v2 }
 0x5f1   : > { %v994_v59 = vmul.f32 %v2039_v3, %v2039_v3 }
 0x5f3   : > { %v1002_v6 = vsel %vm432_vm1, %v994_v59, 0.0 }
 0x5f4   : > { %1003 = vadd.xlane.f32.xlu1 %v1002_v6  ;;  %v983_v7 = vpop.xlane.xlu0 %982 }
 0x5f5   : > { %v987_v11 = vmul.f32 %v983_v7, %v1892_v18 }
 0x5f7   : > { %v2046_v12 = vsub.f32 %v2023_v55, %v987_v11 }
 0x5f9   : > { %v995_v13 = vmul.f32 %v2046_v12, %v2046_v12 }
 0x5fb   : > { %v1005_v14 = vsel %vm432_vm1, %v995_v13, 0.0 }
 0x5fc   : > { %1006 = vadd.xlane.f32.xlu2 %v1005_v14 }
 0x657   : > { %v998_v16 = vpop.xlane.xlu0 %997 }
 0x658   : > { %v1008_v17 = vmul.f32 %v998_v16, %v1892_v18 }
 0x65a   : > { %v1012_v19 = vadd.f32 1e-05, %v1008_v17  ;;  %v1586_v17 = vld [vmem:[%s1856_s24 + $0x38] sm:$0xff] }
 0x65b   : > { %1217 = vmatpush.bf16.msra.mxu3 %v1586_v17 }
 0x65c   : > { %1680 = vrsqrt.f32 %v1012_v19  ;;  %vm1022_vm2 = vweird.f32 %v1012_v19 }
 0x65f   : > { %v1001_v22 = vpop.xlane.xlu0 %1000 }
 0x660   : > { %v1009_v25 = vmul.f32 %v1001_v22, %v1892_v18  ;;  %v1582_v22 = vld [vmem:[%s1856_s24 + $0x18] sm:$0xff] }
 0x662   : > { %v1681_v26 = vpop.eup %1680  ;;  %v1013_v27 = vadd.f32 1e-05, %v1009_v25  ;;  %v1580_v25 = vld [vmem:[%s1856_s24 + $0x8] sm:$0xff] }
 0x663   : > { %v1017_v21 = vmul.f32 %v1681_v26, %v1012_v19  ;;  %vm1023_vm0 = vweird.f32 %v1681_v26  ;;  %v1584_v19 = vld [vmem:[%s1856_s24 + $0x28] sm:$0xff] }
 0x664   : > { %1682 = vrsqrt.f32 %v1013_v27  ;;  %vm1024_vm3 = vmor %vm1022_vm2, %vm1023_vm0  ;;  %vm1032_vm5 = vweird.f32 %v1013_v27 }
 0x665   : > { %v1018_v24 = vmul.f32 %v1681_v26, %v1017_v21  ;;  %v1579_v21 = vld [vmem:[%s1856_s24] sm:$0xff] }
 0x667   : > { %v1019_v28 = vmul.f32 0.5, %v1018_v24  ;;  %v1004_v29 = vpop.xlane.xlu1 %1003 }
 0x668   : > { %v1010_v30 = vmul.f32 %v1004_v29, %v1892_v18 }
 0x669   : > { %v1020_v31 = vsub.f32 1.5, %v1019_v28 }
 0x66a   : > { %v1683_v32 = vpop.eup %1682  ;;  %v1014_v34 = vadd.f32 1e-05, %v1010_v30 }
 0x66b   : > { %v1021_v35 = vmul.f32 %v1681_v26, %v1020_v31  ;;  %v1027_v33 = vmul.f32 %v1683_v32, %v1013_v27  ;;  %vm1033_vm4 = vweird.f32 %v1683_v32 }
 0x66c   : > { %1684 = vrsqrt.f32 %v1014_v34  ;;  %vm1034_vm6 = vmor %vm1032_vm5, %vm1033_vm4  ;;  %vm1042_vm8 = vweird.f32 %v1014_v34 }
 0x66d   : > { %v1028_v36 = vmul.f32 %v1683_v32, %v1027_v33  ;;  %v1025_v37 = vsel %vm1024_vm3, %v1681_v26, %v1021_v35  ;;  %v1076_v26 = vperm.slane %v1925_v10, 6 }
 0x66e   : > { %v1056_v43 = vmul.f32 %v1025_v37, %v988_v60 }
 0x66f   : > { %v1029_v38 = vmul.f32 0.5, %v1028_v36  ;;  %v1007_v39 = vpop.xlane.xlu2 %1006 }
 0x670   : > { %v1011_v40 = vmul.f32 %v1007_v39, %v1892_v18  ;;  %v1061_v5 = vmul.f32 %v1060_v42, %v1056_v43 }
 0x671   : > { %v1030_v41 = vsub.f32 1.5, %v1029_v38 }
 0x672   : > { %v1685_v57 = vpop.eup %1684  ;;  %v1015_v45 = vadd.f32 1e-05, %v1011_v40  ;;  %v1066_v4 = vadd.f32 %v1065_v51, %v1061_v5 }
 0x673   : > { %v1031_v46 = vmul.f32 %v1683_v32, %v1030_v41  ;;  %v1037_v47 = vmul.f32 %v1685_v57, %v1014_v34  ;;  %vm1043_vm7 = vweird.f32 %v1685_v57 }
 0x674   : > { %1686 = vrsqrt.f32 %v1015_v45  ;;  %vm1044_vm9 = vmor %vm1042_vm8, %vm1043_vm7  ;;  %vm1052_vm11 = vweird.f32 %v1015_v45 }
 0x675   : > { %v1035_v23 = vsel %vm1034_vm6, %v1683_v32, %v1031_v46  ;;  %v1038_v50 = vmul.f32 %v1685_v57, %v1037_v47 }
 0x676   : > { %v1057_v53 = vmul.f32 %v1035_v23, %v2032_v63 }
 0x677   : > { %v1039_v54 = vmul.f32 0.5, %v1038_v50 }
 0x678   : > { %v1062_v9 = vmul.f32 %v1060_v42, %v1057_v53 }
 0x679   : > { %v1040_v56 = vsub.f32 1.5, %v1039_v54 }
 0x67a   : > { %v1687_v58 = vpop.eup %1686  ;;  %v1067_v48 = vadd.f32 %v1065_v51, %v1062_v9 }
 0x67b   : > { %v1041_v60 = vmul.f32 %v1685_v57, %v1040_v56  ;;  %v1047_v61 = vmul.f32 %v1687_v58, %v1015_v45  ;;  %vm1053_vm10 = vweird.f32 %v1687_v58 }
 0x67c   : > { %v1070_v62 = vpack.c.bf16 %v1067_v48, %v1066_v4  ;;  %vm1054_vm12 = vmor %vm1052_vm11, %vm1053_vm10 }
 0x67d   : > { %v1048_v8 = vmul.f32 %v1687_v58, %v1047_v61  ;;  %v1045_v0 = vsel %vm1044_vm9, %v1685_v57, %v1041_v60 }
 0x67e   : > { %1530 = vmatmul.msk.bf16.vlgmr.msra.gmra.mxu2 %vm432_vm1, %v1070_v62  ;;  %v1058_v63 = vmul.f32 %v1045_v0, %v2039_v3  ;;  %v1585_v3 = vld [vmem:[%s1856_s24 + $0x30] sm:$0xff] }
 0x67f   : > { %v1049_v1 = vmul.f32 0.5, %v1048_v8  ;;  %1218 = vmatpush.bf16.msra.mxu3 %v1585_v3 }
 0x680   : > { %v1063_v11 = vmul.f32 %v1060_v42, %v1058_v63 }
 0x681   : > { %v1050_v2 = vsub.f32 1.5, %v1049_v1 }
 0x682   : > { %v1068_v14 = vadd.f32 %v1065_v51, %v1063_v11 }
 0x683   : > { %v1051_v59 = vmul.f32 %v1687_v58, %v1050_v2  ;;  %1219 = vmatpush.bf16.msra.mxu3 %v1584_v19 }
 0x685   : > { %v1055_v6 = vsel %vm1054_vm12, %v1687_v58, %v1051_v59 }
 0x686   : > { %v1059_v7 = vmul.f32 %v1055_v6, %v2046_v12  ;;  %v1581_v12 = vld [vmem:[%s1856_s24 + $0x10] sm:$0xff] }
 0x687   : > { %1220 = vmatpush.bf16.msra.mxu3 %v1583_v20 }
 0x688   : > { %v1064_v13 = vmul.f32 %v1060_v42, %v1059_v7 }
 0x68a   : > { %v1069_v15 = vadd.f32 %v1065_v51, %v1064_v13 }
 0x68b   : > { %1221 = vmatpush.bf16.msra.mxu3 %v1582_v22 }
 0x68c   : > { %v1071_v16 = vpack.c.bf16 %v1069_v15, %v1068_v14  ;;  %v1168_v14 = vperm.slane %v1925_v10, 7 }
 0x68e   : > { %1531 = vmatmul.msk.bf16.gmra.mxu2 %vm432_vm1, %v1071_v16 }
 0x68f   : > { %1222 = vmatpush.bf16.msra.mxu3 %v1581_v12 }
 0x693   : > { %1223 = vmatpush.bf16.msra.mxu3 %v1580_v25 }
 0x697   : > { %1224 = vmatpush.bf16.msra.mxu3 %v1579_v21 }
 0x701   : > { %v1104_v27 = vpop.f32.mrf.mxu2 }
 0x702   : > { %v1105_v24 = vadd.f32 %v1104_v27, %v1076_v26 }
 0x704   : > { %v1114_v28 = vmul.f32 %v1105_v24, %v1105_v24 }
 0x706   : > { %v1118_v29 = vmul.f32 %v1114_v28, %v1105_v24 }
 0x708   : > { %v1122_v30 = vmul.f32 0.044715, %v1118_v29 }
 0x709   : > { %v1106_v31 = vpop.f32.mrf.mxu2 }
 0x70a   : > { %v1126_v32 = vadd.f32 %v1122_v30, %v1105_v24  ;;  %v1107_v34 = vadd.f32 %v1106_v31, %v1076_v26 }
 0x70c   : > { %v1130_v35 = vmul.f32 0.7978846, %v1126_v32  ;;  %v1115_v33 = vmul.f32 %v1107_v34, %v1107_v34 }
 0x70e   : > { %v1119_v36 = vmul.f32 %v1115_v33, %v1107_v34  ;;  %1688 = vtanh.f32 %v1130_v35 }
 0x710   : > { %v1123_v37 = vmul.f32 0.044715, %v1119_v36 }
 0x711   : > { %v1109_v38 = vpop.f32.mrf.mxu2 }
 0x712   : > { %v1127_v39 = vadd.f32 %v1123_v37, %v1107_v34  ;;  %v1110_v40 = vadd.f32 %v1109_v38, %v1076_v26 }
 0x714   : > { %v1131_v41 = vmul.f32 0.7978846, %v1127_v39  ;;  %v1116_v57 = vmul.f32 %v1110_v40, %v1110_v40  ;;  %v1689_v42 = vpop.eup %1688 }
 0x715   : > { %v1138_v46 = vadd.f32 1.0, %v1689_v42 }
 0x716   : > { %1690 = vtanh.f32 %v1131_v41  ;;  %v1120_v43 = vmul.f32 %v1116_v57, %v1110_v40 }
 0x717   : > { %v1142_v54 = vmul.f32 0.5, %v1138_v46 }
 0x718   : > { %v1124_v45 = vmul.f32 0.044715, %v1120_v43 }
 0x719   : > { %v1111_v47 = vpop.f32.mrf.mxu2  ;;  %v1146_v48 = vmul.f32 %v1142_v54, %v1105_v24 }
 0x71a   : > { %v1128_v23 = vadd.f32 %v1124_v45, %v1110_v40  ;;  %v1112_v50 = vadd.f32 %v1111_v47, %v1076_v26 }
 0x71c   : > { %v1691_v51 = vpop.eup %1690  ;;  %v1117_v5 = vmul.f32 %v1112_v50, %v1112_v50  ;;  %v1132_v53 = vmul.f32 0.7978846, %v1128_v23 }
 0x71d   : > { %v1139_v9 = vadd.f32 1.0, %v1691_v51 }
 0x71e   : > { %v1121_v56 = vmul.f32 %v1117_v5, %v1112_v50  ;;  %1692 = vtanh.f32 %v1132_v53 }
 0x71f   : > { %v1143_v58 = vmul.f32 0.5, %v1139_v9 }
 0x720   : > { %v1125_v4 = vmul.f32 0.044715, %v1121_v56 }
 0x721   : > { %v1147_v60 = vmul.f32 %v1143_v58, %v1107_v34 }
 0x722   : > { %v1129_v61 = vadd.f32 %v1125_v4, %v1112_v50 }
 0x723   : > { %v1150_v62 = vpack.c.bf16 %v1147_v60, %v1146_v48 }
 0x724   : > { %v1133_v8 = vmul.f32 0.7978846, %v1129_v61  ;;  %v1693_v0 = vpop.eup %1692 }
 0x725   : > { %1225 = vmatmul.bf16.vlgmr.msra.gmra.mxu3 %v1150_v62  ;;  %v1140_v1 = vadd.f32 1.0, %v1693_v0 }
 0x726   : > { %1694 = vtanh.f32 %v1133_v8 }
 0x727   : > { %v1144_v59 = vmul.f32 0.5, %v1140_v1 }
 0x729   : > { %v1148_v7 = vmul.f32 %v1144_v59, %v1110_v40 }
 0x72c   : > { %v1695_v2 = vpop.eup %1694 }
 0x72d   : > { %v1141_v63 = vadd.f32 1.0, %v1695_v2 }
 0x72f   : > { %v1145_v6 = vmul.f32 0.5, %v1141_v63 }
 0x731   : > { %v1149_v11 = vmul.f32 %v1145_v6, %v1112_v50 }
 0x733   : > { %v1151_v13 = vpack.c.bf16 %v1149_v11, %v1148_v7 }
 0x735   : > { %1230 = vmatmul.bf16.gmra.mxu3 %v1151_v13 }
 0x7a8   : > { %v1226_v15 = vpop.f32.mrf.mxu3 }
 0x7a9   : > { %v1227_v16 = vadd.f32 %v1226_v15, %v1168_v14 }
 0x7ab   : > { %v1236_v17 = vadd.f32 %v1227_v16, %v2008_v44 }
 0x7ad   : > { %1240 = vst.msk [vmem:[#allocation2] sm:$0xff] %vm432_vm1, %v1236_v17 }
 0x7b0   : > { %v1228_v3 = vpop.f32.mrf.mxu3 }
 0x7b1   : > { %v1229_v19 = vadd.f32 %v1228_v3, %v1168_v14 }
 0x7b3   : > { %v1237_v20 = vadd.f32 %v1229_v19, %v2013_v49 }
 0x7b5   : > { %1241 = vst.msk [vmem:[#allocation2 + $0x8] sm:$0xff] %vm432_vm1, %v1237_v20 }
 0x7b8   : > { %v1231_v22 = vpop.f32.mrf.mxu3 }
 0x7b9   : > { %v1232_v12 = vadd.f32 %v1231_v22, %v1168_v14 }
 0x7bb   : > { %v1238_v25 = vadd.f32 %v1232_v12, %v2018_v52 }
 0x7bd   : > { %1242 = vst.msk [vmem:[#allocation2 + $0x10] sm:$0xff] %vm432_vm1, %v1238_v25 }
 0x7c0   : > { %v1233_v26 = vpop.f32.mrf.mxu3 }
 0x7c1   : > { %v1234_v10 = vadd.f32 %v1233_v26, %v1168_v14  ;;  %1247 = sbr.rel (%p1564_p6) target bundleno = 2268 (0x8dc), region = 60 }
 0x7c3   : > { %v1239_v27 = vadd.f32 %v1234_v10, %v2023_v55 }
 0x7c5   : > { %1243 = vst.msk [vmem:[#allocation2 + $0x18] sm:$0xff] %vm432_vm1, %v1239_v27 }
 0x7c6   : > { %v1255_v44 = vsel %vm432_vm1, %v1238_v25, 0.0  ;;  %v1249_v49 = vsel %vm432_vm1, %v1236_v17, 0.0  ;;  %v1258_v21 = vsel %vm432_vm1, %v1239_v27, 0.0  ;;  %v1252_v52 = vsel %vm432_vm1, %v1237_v20, 0.0  ;;  %v1248_v63 = vld [vmem:[%s2142_s7] sm:$0x3] }
 0x7c7   : > { %1256 = vadd.xlane.f32.xlu1 %v1255_v44  ;;  %1250 = vadd.xlane.f32.xlu0 %v1249_v49  ;;  %v1337_v14 = vperm.slane %v1248_v63, 0 }
 0x7cf   : > { %1259 = vadd.xlane.f32.xlu1 %v1258_v21  ;;  %1253 = vadd.xlane.f32.xlu0 %v1252_v52 }
 0x83a   : > { %v1257_v24 = vpop.xlane.xlu1 %1256  ;;  %v1251_v28 = vpop.xlane.xlu0 %1250 }
 0x83b   : > { %v1263_v55 = vmul.f32 %v1257_v24, %v1892_v18  ;;  %v1261_v29 = vmul.f32 %v1251_v28, %v1892_v18 }
 0x83d   : > { %v2089_v30 = vsub.f32 %v1238_v25, %v1263_v55  ;;  %v1265_v31 = vsub.f32 %v1236_v17, %v1261_v29 }
 0x83f   : > { %v1271_v32 = vmul.f32 %v2089_v30, %v2089_v30  ;;  %v1269_v34 = vmul.f32 %v1265_v31, %v1265_v31 }
 0x841   : > { %v1279_v35 = vsel %vm432_vm1, %v1271_v32, 0.0  ;;  %v1273_v33 = vsel %vm432_vm1, %v1269_v34, 0.0 }
 0x842   : > { %v1260_v36 = vpop.xlane.xlu1 %1259  ;;  %1280 = vadd.xlane.f32.xlu0 %v1279_v35  ;;  %1274 = vadd.xlane.f32.xlu2 %v1273_v33  ;;  %v1254_v37 = vpop.xlane.xlu0 %1253 }
 0x843   : > { %v1264_v38 = vmul.f32 %v1260_v36, %v1892_v18  ;;  %v1262_v39 = vmul.f32 %v1254_v37, %v1892_v18 }
 0x845   : > { %v2097_v40 = vsub.f32 %v1239_v27, %v1264_v38  ;;  %v2099_v41 = vsub.f32 %v1237_v20, %v1262_v39  ;;  %v1342_v20 = vperm.slane %v1248_v63, 1 }
 0x847   : > { %v1272_v57 = vmul.f32 %v2097_v40, %v2097_v40  ;;  %v1270_v42 = vmul.f32 %v2099_v41, %v2099_v41 }
 0x849   : > { %v1282_v43 = vsel %vm432_vm1, %v1272_v57, 0.0  ;;  %v1276_v45 = vsel %vm432_vm1, %v1270_v42, 0.0 }
 0x84a   : > { %1283 = vadd.xlane.f32.xlu1 %v1282_v43  ;;  %1277 = vadd.xlane.f32.xlu2 %v1276_v45 }
 0x8b5   : > { %v1275_v46 = vpop.xlane.xlu2 %1274  ;;  %v1281_v47 = vpop.xlane.xlu0 %1280 }
 0x8b6   : > { %v1285_v23 = vmul.f32 %v1275_v46, %v1892_v18  ;;  %v1287_v50 = vmul.f32 %v1281_v47, %v1892_v18 }
 0x8b8   : > { %v1289_v51 = vadd.f32 1e-05, %v1285_v23  ;;  %v1291_v5 = vadd.f32 1e-05, %v1287_v50 }
 0x8ba   : > { %1696 = vrsqrt.f32 %v1289_v51  ;;  %vm1299_vm15 = vweird.f32 %v1289_v51  ;;  %vm1319_vm2 = vweird.f32 %v1291_v5 }
 0x8bb   : > { %1698 = vrsqrt.f32 %v1291_v5 }
 0x8bd   : > { %v1284_v53 = vpop.xlane.xlu1 %1283  ;;  %v1278_v54 = vpop.xlane.xlu2 %1277 }
 0x8be   : > { %v1288_v9 = vmul.f32 %v1284_v53, %v1892_v18  ;;  %v1286_v56 = vmul.f32 %v1278_v54, %v1892_v18 }
 0x8c0   : > { %v1697_v58 = vpop.eup %1696  ;;  %v1292_v4 = vadd.f32 1e-05, %v1288_v9  ;;  %v1290_v48 = vadd.f32 1e-05, %v1286_v56 }
 0x8c1   : > { %v1699_v60 = vpop.eup %1698  ;;  %v1294_v61 = vmul.f32 %v1697_v58, %v1289_v51  ;;  %vm1300_vm13 = vweird.f32 %v1697_v58 }
 0x8c2   : > { %v1314_v62 = vmul.f32 %v1699_v60, %v1291_v5  ;;  %1700 = vrsqrt.f32 %v1292_v4  ;;  %vm1320_vm14 = vweird.f32 %v1699_v60  ;;  %vm1301_vm0 = vmor %vm1299_vm15, %vm1300_vm13  ;;  %vm1329_vm6 = vweird.f32 %v1292_v4 }
 0x8c3   : > { %v1295_v8 = vmul.f32 %v1697_v58, %v1294_v61  ;;  %1702 = vrsqrt.f32 %v1290_v48  ;;  %vm1321_vm3 = vmor %vm1319_vm2, %vm1320_vm14  ;;  %vm1309_vm8 = vweird.f32 %v1290_v48 }
 0x8c4   : > { %v1315_v0 = vmul.f32 %v1699_v60, %v1314_v62 }
 0x8c5   : > { %v1296_v1 = vmul.f32 0.5, %v1295_v8 }
 0x8c6   : > { %v1316_v2 = vmul.f32 0.5, %v1315_v0 }
 0x8c7   : > { %v1297_v59 = vsub.f32 1.5, %v1296_v1 }
 0x8c8   : > { %v1701_v6 = vpop.eup %1700  ;;  %v1317_v18 = vsub.f32 1.5, %v1316_v2 }
 0x8c9   : > { %v1703_v7 = vpop.eup %1702  ;;  %v1298_v11 = vmul.f32 %v1697_v58, %v1297_v59  ;;  %v1324_v13 = vmul.f32 %v1701_v6, %v1292_v4  ;;  %vm1330_vm4 = vweird.f32 %v1701_v6 }
 0x8ca   : > { %v1318_v15 = vmul.f32 %v1699_v60, %v1317_v18  ;;  %v1304_v16 = vmul.f32 %v1703_v7, %v1290_v48  ;;  %vm1310_vm5 = vweird.f32 %v1703_v7  ;;  %vm1331_vm7 = vmor %vm1329_vm6, %vm1330_vm4 }
 0x8cb   : > { %v1302_v17 = vsel %vm1301_vm0, %v1697_v58, %v1298_v11  ;;  %v1325_v3 = vmul.f32 %v1701_v6, %v1324_v13  ;;  %vm1311_vm9 = vmor %vm1309_vm8, %vm1310_vm5 }
 0x8cc   : > { %v1333_v19 = vmul.f32 %v1302_v17, %v1265_v31  ;;  %v1322_v22 = vsel %vm1321_vm3, %v1699_v60, %v1318_v15  ;;  %v1305_v12 = vmul.f32 %v1703_v7, %v1304_v16 }
 0x8cd   : > { %v1335_v25 = vmul.f32 %v1322_v22, %v2089_v30  ;;  %v1326_v26 = vmul.f32 0.5, %v1325_v3 }
 0x8ce   : > { %v1338_v10 = vmul.f32 %v1337_v14, %v1333_v19  ;;  %v1306_v27 = vmul.f32 0.5, %v1305_v12 }
 0x8cf   : > { %v1340_v44 = vmul.f32 %v1337_v14, %v1335_v25  ;;  %v1327_v49 = vsub.f32 1.5, %v1326_v26 }
 0x8d0   : > { %v1343_v21 = vadd.f32 %v1342_v20, %v1338_v10  ;;  %v1307_v52 = vsub.f32 1.5, %v1306_v27 }
 0x8d1   : > { %v1345_v24 = vadd.f32 %v1342_v20, %v1340_v44  ;;  %v1328_v28 = vmul.f32 %v1701_v6, %v1327_v49 }
 0x8d2   : > { %1347 = vst.msk [vmem:[#allocation2] sm:$0xff] %vm432_vm1, %v1343_v21  ;;  %v1308_v55 = vmul.f32 %v1703_v7, %v1307_v52 }
 0x8d3   : > { %1349 = vst.msk [vmem:[#allocation2 + $0x10] sm:$0xff] %vm432_vm1, %v1345_v24  ;;  %v1332_v29 = vsel %vm1331_vm7, %v1701_v6, %v1328_v28 }
 0x8d4   : > { %v1336_v30 = vmul.f32 %v1332_v29, %v2097_v40  ;;  %v1312_v31 = vsel %vm1311_vm9, %v1703_v7, %v1308_v55 }
 0x8d5   : > { %v1334_v32 = vmul.f32 %v1312_v31, %v2099_v41 }
 0x8d6   : > { %v1341_v34 = vmul.f32 %v1337_v14, %v1336_v30 }
 0x8d7   : > { %v1339_v35 = vmul.f32 %v1337_v14, %v1334_v32 }
 0x8d8   : > { %v1346_v33 = vadd.f32 %v1342_v20, %v1341_v34 }
 0x8d9   : > { %v1344_v36 = vadd.f32 %v1342_v20, %v1339_v35 }
 0x8da   : > { %1350 = vst.msk [vmem:[#allocation2 + $0x18] sm:$0xff] %vm432_vm1, %v1346_v33 }
 0x8db   : > { %1348 = vst.msk [vmem:[#allocation2 + $0x8] sm:$0xff] %vm432_vm1, %v1344_v36 }
 0x8dc PF: > { %p1591_p7 = scmp.eq.s32.totalorder %s1479_s30, 1  ;;  %s1362_s11 = sshll.u32 %s2143_s8, 4  ;;  %s1363_s11 = int_to_ptr.hbm [resolvable:$true] %s1362_s11 }
 0x8dd   : > { %s1767_s19 = smov [#allocation2]   ;;  %s1768_s20 = smov 128  }
 0x8de   : > { %s1360_s12 = sshll.u32 %s1767_s19, 4  ;;  %s1769_s10 = smov 8   ;;  %s1361_s12 = int_to_ptr.vmem [resolvable:$true] %s1360_s12 }
 0x8df   : > { %1588 = dma.vmem_to_hbm [thread:$0]  (%p1591_p7), %s1361_s12, 512, %s1363_s11, [#allocation3], %s1768_s20, %s1768_s20, %s1769_s10  }
 0x8e0   : > { %1745 = dma.done.wait (%p1591_p7), [#allocation3], 512  }
 0x8e1   : > { %1747 = vsyncadd (%p1591_p7), [#allocation3], 4294966784 }
 0x8e2 PF: > { %s19_s29 = sadd.s32 1, %s1758_s29   ;;  %s2144_s27 = smov %s1754_s28 }
 0x8e3   : > { %p16_p8 = scmp.ge.s32.totalorder %s19_s29, 4   ;;  %s2145_s28 = smov %s2147_s9 }
 0x8e5   :  { %18 = sbr.rel (!%p16_p8) target bundleno = 2 (0x2), region = 103 }
 0x8ea   :  { %1379 = vsyncpa [#allocation3], 1 }
 0x8eb   :  { %1381 = vsyncpa [#allocation3 + $0x1], 1 }

</bundles_post_ra>
